<compile_context>
chip_gen: v7x
topology: tpu7x:2x2x1
jax: 0.10.0
libtpu: 0.0.40
codegen_flags: <defaults>
</compile_context>

<pallas_src>
import functools

import jax
import jax.numpy as jnp
from jax.experimental import pallas as pl
from jax.experimental.pallas import tpu as pltpu

TB_MAX = 2048                      # max batch tile (multiple of 256)
_VMEM_BUDGET = 24 * 1024 * 1024    # target per-step VMEM footprint
_VMEM_LIMIT = 40 * 1024 * 1024     # scoped VMEM limit (safe on v5e/v6e/v7x)


def _round_up(x, m):
    return ((x + m - 1) // m) * m


def _bf16_vpu():
    """True on chips with a bf16 VALU (v6e, v7x); False on v5e and older."""
    kind = jax.devices()[0].device_kind.lower()
    return not any(v in kind for v in ("v2", "v3", "v4", "v5"))


def _vmem_estimate(tb, in_dim, out_dim):
    x_tile = 2 * tb * in_dim * 4                    # f32 x tile, double-buffered
    out_tile = 2 * tb * out_dim * 4                 # f32 out tile, double-buffered
    weights = 2 * 2 * (in_dim * 512 + 512 * 256 + 256 * 128 + 128 * out_dim)  # bf16, 2 bufs
    biases = 2 * 4 * (512 + 256 + 128 + out_dim)
    acts = tb * (512 + 512 + 256 + 256 + 128 + 128) * 4   # rough live inter-layer values
    return x_tile + out_tile + weights + biases + acts


def _pick_tb(batch, in_dim, out_dim):
    """Batch tile: multiple of 256, >=2 grid steps when possible, bounded by the VMEM budget."""
    tb = min(TB_MAX, max(256, _round_up(pl.cdiv(batch, 2), 256)))
    while tb > 256 and _vmem_estimate(tb, in_dim, out_dim) > _VMEM_BUDGET:
        tb -= 256
    return tb


def mlp_kernel(x_ref, w1_ref, b1_ref, w2_ref, b2_ref, w3_ref, b3_ref,
               w4_ref, b4_ref, o_ref, *, act_dtype):
    bf16 = jnp.bfloat16

    def hidden_layer(h_bf16, w_ref, b_ref):
        # MXU matmul with f32 accumulation; bias-add + ReLU on the VPU in act_dtype
        # (bf16 on v6e/v7x halves the VALU epilogue; f32 on v5e which has no bf16 VALU).
        acc = jnp.dot(h_bf16, w_ref[...], preferred_element_type=jnp.float32)
        h = jnp.maximum(acc.astype(act_dtype) + b_ref[...], 0)
        return h.astype(bf16)

    h = x_ref[...].astype(bf16)                 # cast in-kernel; no wrapper pad/cast pass
    h = hidden_layer(h, w1_ref, b1_ref)         # Linear(in, 512) + ReLU   (Dropout = identity)
    h = hidden_layer(h, w2_ref, b2_ref)         # Linear(512, 256) + ReLU  (Dropout = identity)
    h = hidden_layer(h, w3_ref, b3_ref)         # Linear(256, 128) + ReLU  (Dropout = identity)
    # Final layer + sigmoid in f32 (only out_dim lanes; EUP handles the exp).
    logits = jnp.dot(h, w4_ref[...], preferred_element_type=jnp.float32) + b4_ref[...]
    o_ref[...] = jax.nn.sigmoid(logits).astype(o_ref.dtype)


@jax.jit
def mlp_forward(x, params):
    """x: (B, input_dim) float32. params: weights (in,out) + biases (1,out), as in init_params."""
    B, in_dim = x.shape
    out_dim = params["w4"].shape[1]

    tb = _pick_tb(B, in_dim, out_dim)
    grid = (pl.cdiv(B, tb),)

    act_dtype = jnp.bfloat16 if _bf16_vpu() else jnp.float32

    # bf16 MXU operands; hidden-layer biases in the epilogue dtype; final bias stays f32.
    w1 = params["w1"].astype(jnp.bfloat16)
    w2 = params["w2"].astype(jnp.bfloat16)
    w3 = params["w3"].astype(jnp.bfloat16)
    w4 = params["w4"].astype(jnp.bfloat16)
    b1 = params["b1"].astype(act_dtype)
    b2 = params["b2"].astype(act_dtype)
    b3 = params["b3"].astype(act_dtype)
    b4 = params["b4"]

    def resident(arr):
        # Same block every grid step -> fetched once, stays resident in VMEM.
        return pl.BlockSpec(arr.shape, lambda i: (0, 0))

    in_specs = [
        pl.BlockSpec((tb, in_dim), lambda i: (i, 0)),   # x tile (f32, cast in kernel)
        resident(w1), resident(b1),
        resident(w2), resident(b2),
        resident(w3), resident(b3),
        resident(w4), resident(b4),
    ]
    # Unpadded, un-tiled last dim (== full array dim) -> 8x less output HBM traffic for small
    # out_dim vs a 128-lane padded f32 slab.
    out_specs = pl.BlockSpec((tb, out_dim), lambda i: (i, 0))

    flops = 2 * B * (in_dim * 512 + 512 * 256 + 256 * 128 + 128 * out_dim)
    transcendentals = 2 * B * out_dim   # sigmoid ~ exp + reciprocal
    bytes_accessed = (x.size * 4
                      + 2 * (w1.size + w2.size + w3.size + w4.size)
                      + b1.size * b1.dtype.itemsize + b2.size * b2.dtype.itemsize
                      + b3.size * b3.dtype.itemsize + b4.size * 4
                      + B * out_dim * 4)

    out = pl.pallas_call(
        functools.partial(mlp_kernel, act_dtype=act_dtype),
        out_shape=jax.ShapeDtypeStruct((B, out_dim), jnp.float32),
        grid=grid,
        in_specs=in_specs,
        out_specs=out_specs,
        compiler_params=pltpu.CompilerParams(
            dimension_semantics=("parallel",),
            vmem_limit_bytes=_VMEM_LIMIT,
        ),
        cost_estimate=pl.CostEstimate(
            flops=flops,
            transcendentals=transcendentals,
            bytes_accessed=bytes_accessed,
        ),
    )(x, w1, b1, w2, b2, w3, b3, w4, b4)

    return out


def init_params(key, input_dim, output_dim):
    """Deterministic init mirroring the nn.Linear shapes (weights stored transposed: (in,out))."""
    dims = [(input_dim, 512), (512, 256), (256, 128), (128, output_dim)]
    params = {}
    for i, (din, dout) in enumerate(dims, start=1):
        key, kw, kb = jax.random.split(key, 3)
        bound = 1.0 / jnp.sqrt(din)
        params[f"w{i}"] = jax.random.uniform(
            kw, (din, dout), jnp.float32, minval=-bound, maxval=bound)
        params[f"b{i}"] = jax.random.uniform(
            kb, (1, dout), jnp.float32, minval=-bound, maxval=bound)
    return params


def mlp_reference(x, params, act_dtype):
    """Pure-JAX reference using the same bf16-operand / f32-accumulate / act_dtype-epilogue scheme."""
    bf16 = jnp.bfloat16

    def hidden(h, w, b):
        acc = jnp.dot(h.astype(bf16), w.astype(bf16), preferred_element_type=jnp.float32)
        return jnp.maximum(acc.astype(act_dtype) + b.astype(act_dtype), 0)

    h = hidden(x, params["w1"], params["b1"])
    h = hidden(h, params["w2"], params["b2"])
    h = hidden(h, params["w3"], params["b3"])
    logits = jnp.dot(h.astype(bf16), params["w4"].astype(bf16),
                     preferred_element_type=jnp.float32) + params["b4"]
    return jax.nn.sigmoid(logits)


if __name__ == "__main__":
    key = jax.random.PRNGKey(0)
    k_params, k_x = jax.random.split(key)

    batch, input_dim, output_dim = 8, 32, 16
    params = init_params(k_params, input_dim, output_dim)
    x = jax.random.normal(k_x, (batch, input_dim), dtype=jnp.float32)

    out = jax.block_until_ready(mlp_forward(x, params))

    act_dtype = jnp.bfloat16 if _bf16_vpu() else jnp.float32
    ref = mlp_reference(x, params, act_dtype)
    assert out.shape == (batch, output_dim)
    assert jnp.allclose(out, ref, atol=1e-2, rtol=1e-2), "mismatch vs reference"

    print("KERNEL_OK")
</pallas_src>

<mosaic_0001>
module attributes {stable_mosaic.version = 11 : i64} {
  func.func @mlp_kernel(%arg0: i32, %arg1: memref<256x32xf32, #tpu.memory_space<vmem>>, %arg2: memref<32x512xbf16, #tpu.memory_space<vmem>>, %arg3: memref<1x512xbf16, #tpu.memory_space<vmem>>, %arg4: memref<512x256xbf16, #tpu.memory_space<vmem>>, %arg5: memref<1x256xbf16, #tpu.memory_space<vmem>>, %arg6: memref<256x128xbf16, #tpu.memory_space<vmem>>, %arg7: memref<1x128xbf16, #tpu.memory_space<vmem>>, %arg8: memref<128x16xbf16, #tpu.memory_space<vmem>>, %arg9: memref<1x16xf32, #tpu.memory_space<vmem>>, %arg10: memref<256x16xf32, #tpu.memory_space<vmem>>) attributes {dimension_semantics = [#tpu.dimension_semantics<parallel>], iteration_bounds = array<i64: 1>, scalar_prefetch = 0 : i64, scratch_operands = 0 : i64, tpu.core_type = #tpu.core_type<tc>, window_params = [{transform_indices = @transform_0, window_bounds = array<i64: 256, 32>}, {pipeline_mode = #tpu.pipeline_mode<synchronous>, transform_indices = @transform_1, window_bounds = array<i64: 32, 512>}, {pipeline_mode = #tpu.pipeline_mode<synchronous>, transform_indices = @transform_2, window_bounds = array<i64: 1, 512>}, {pipeline_mode = #tpu.pipeline_mode<synchronous>, transform_indices = @transform_3, window_bounds = array<i64: 512, 256>}, {pipeline_mode = #tpu.pipeline_mode<synchronous>, transform_indices = @transform_4, window_bounds = array<i64: 1, 256>}, {pipeline_mode = #tpu.pipeline_mode<synchronous>, transform_indices = @transform_5, window_bounds = array<i64: 256, 128>}, {pipeline_mode = #tpu.pipeline_mode<synchronous>, transform_indices = @transform_6, window_bounds = array<i64: 1, 128>}, {pipeline_mode = #tpu.pipeline_mode<synchronous>, transform_indices = @transform_7, window_bounds = array<i64: 128, 16>}, {pipeline_mode = #tpu.pipeline_mode<synchronous>, transform_indices = @transform_8, window_bounds = array<i64: 1, 16>}, {transform_indices = @transform_9, window_bounds = array<i64: 256, 16>}]} {
    %c0 = arith.constant 0 : index
    %c0_0 = arith.constant 0 : index
    %0 = vector.load %arg1[%c0, %c0_0] : memref<256x32xf32, #tpu.memory_space<vmem>>, vector<256x32xf32>
    %1 = arith.truncf %0 : vector<256x32xf32> to vector<256x32xbf16>
    %c0_1 = arith.constant 0 : index
    %c0_2 = arith.constant 0 : index
    %2 = vector.load %arg2[%c0_1, %c0_2] : memref<32x512xbf16, #tpu.memory_space<vmem>>, vector<32x512xbf16>
    %cst = arith.constant dense<0.000000e+00> : vector<256x512xf32>
    %3 = tpu.matmul %1, %2, %cst {dimension_numbers = #tpu.dot_dimension_numbers<[1], [0], [0], [1], [0, 0, 1, 1], [], []>} : vector<256x32xbf16>, vector<32x512xbf16>, vector<256x512xf32> -> vector<256x512xf32>
    %4 = arith.truncf %3 : vector<256x512xf32> to vector<256x512xbf16>
    %c0_3 = arith.constant 0 : index
    %c0_4 = arith.constant 0 : index
    %5 = vector.load %arg3[%c0_3, %c0_4] : memref<1x512xbf16, #tpu.memory_space<vmem>>, vector<1x512xbf16>
    %6 = vector.broadcast %5 : vector<1x512xbf16> to vector<256x512xbf16>
    %7 = arith.addf %4, %6 : vector<256x512xbf16>
    %cst_5 = arith.constant 0.000000e+00 : bf16
    %8 = vector.broadcast %cst_5 : bf16 to vector<256x512xbf16>
    %9 = arith.maximumf %7, %8 : vector<256x512xbf16>
    %c0_6 = arith.constant 0 : index
    %c0_7 = arith.constant 0 : index
    %10 = vector.load %arg4[%c0_6, %c0_7] : memref<512x256xbf16, #tpu.memory_space<vmem>>, vector<512x256xbf16>
    %cst_8 = arith.constant dense<0.000000e+00> : vector<256x256xf32>
    %11 = tpu.matmul %9, %10, %cst_8 {dimension_numbers = #tpu.dot_dimension_numbers<[1], [0], [0], [1], [0, 0, 1, 1], [], []>} : vector<256x512xbf16>, vector<512x256xbf16>, vector<256x256xf32> -> vector<256x256xf32>
    %12 = arith.truncf %11 : vector<256x256xf32> to vector<256x256xbf16>
    %c0_9 = arith.constant 0 : index
    %c0_10 = arith.constant 0 : index
    %13 = vector.load %arg5[%c0_9, %c0_10] : memref<1x256xbf16, #tpu.memory_space<vmem>>, vector<1x256xbf16>
    %14 = vector.broadcast %13 : vector<1x256xbf16> to vector<256x256xbf16>
    %15 = arith.addf %12, %14 : vector<256x256xbf16>
    %cst_11 = arith.constant 0.000000e+00 : bf16
    %16 = vector.broadcast %cst_11 : bf16 to vector<256x256xbf16>
    %17 = arith.maximumf %15, %16 : vector<256x256xbf16>
    %c0_12 = arith.constant 0 : index
    %c0_13 = arith.constant 0 : index
    %18 = vector.load %arg6[%c0_12, %c0_13] : memref<256x128xbf16, #tpu.memory_space<vmem>>, vector<256x128xbf16>
    %cst_14 = arith.constant dense<0.000000e+00> : vector<256x128xf32>
    %19 = tpu.matmul %17, %18, %cst_14 {dimension_numbers = #tpu.dot_dimension_numbers<[1], [0], [0], [1], [0, 0, 1, 1], [], []>} : vector<256x256xbf16>, vector<256x128xbf16>, vector<256x128xf32> -> vector<256x128xf32>
    %20 = arith.truncf %19 : vector<256x128xf32> to vector<256x128xbf16>
    %c0_15 = arith.constant 0 : index
    %c0_16 = arith.constant 0 : index
    %21 = vector.load %arg7[%c0_15, %c0_16] : memref<1x128xbf16, #tpu.memory_space<vmem>>, vector<1x128xbf16>
    %22 = vector.broadcast %21 : vector<1x128xbf16> to vector<256x128xbf16>
    %23 = arith.addf %20, %22 : vector<256x128xbf16>
    %cst_17 = arith.constant 0.000000e+00 : bf16
    %24 = vector.broadcast %cst_17 : bf16 to vector<256x128xbf16>
    %25 = arith.maximumf %23, %24 : vector<256x128xbf16>
    %c0_18 = arith.constant 0 : index
    %c0_19 = arith.constant 0 : index
    %26 = vector.load %arg8[%c0_18, %c0_19] : memref<128x16xbf16, #tpu.memory_space<vmem>>, vector<128x16xbf16>
    %cst_20 = arith.constant dense<0.000000e+00> : vector<256x16xf32>
    %27 = tpu.matmul %25, %26, %cst_20 {dimension_numbers = #tpu.dot_dimension_numbers<[1], [0], [0], [1], [0, 0, 1, 1], [], []>} : vector<256x128xbf16>, vector<128x16xbf16>, vector<256x16xf32> -> vector<256x16xf32>
    %c0_21 = arith.constant 0 : index
    %c0_22 = arith.constant 0 : index
    %28 = vector.load %arg9[%c0_21, %c0_22] : memref<1x16xf32, #tpu.memory_space<vmem>>, vector<1x16xf32>
    %29 = vector.broadcast %28 : vector<1x16xf32> to vector<256x16xf32>
    %30 = arith.addf %27, %29 : vector<256x16xf32>
    %31 = arith.negf %30 : vector<256x16xf32>
    %32 = math.exp %31 : vector<256x16xf32>
    %cst_23 = arith.constant 1.000000e+00 : f32
    %33 = vector.broadcast %cst_23 : f32 to vector<256x16xf32>
    %34 = arith.addf %33, %32 : vector<256x16xf32>
    %35 = arith.divf %33, %34 : vector<256x16xf32>
    %c0_24 = arith.constant 0 : index
    %c0_25 = arith.constant 0 : index
    %36 = vector.load %arg10[%c0_24, %c0_25] : memref<256x16xf32, #tpu.memory_space<vmem>>, vector<256x16xf32>
    tpu.vector_store %arg10[%c0_24, %c0_25], %35 {strides = array<i32>} : memref<256x16xf32, #tpu.memory_space<vmem>>, vector<256x16xf32>,
    return
  }
  func.func @transform_0(%arg0: i32) -> (i32, i32) {
    %c0_i32 = arith.constant 0 : i32
    %c0_i32_0 = arith.constant 0 : i32
    return %arg0, %c0_i32 : i32, i32
  }
  func.func @transform_1(%arg0: i32) -> (i32, i32) {
    %c0_i32 = arith.constant 0 : i32
    %c0_i32_0 = arith.constant 0 : i32
    %c0_i32_1 = arith.constant 0 : i32
    return %c0_i32, %c0_i32_0 : i32, i32
  }
  func.func @transform_2(%arg0: i32) -> (i32, i32) {
    %c0_i32 = arith.constant 0 : i32
    %c0_i32_0 = arith.constant 0 : i32
    %c0_i32_1 = arith.constant 0 : i32
    return %c0_i32, %c0_i32_0 : i32, i32
  }
  func.func @transform_3(%arg0: i32) -> (i32, i32) {
    %c0_i32 = arith.constant 0 : i32
    %c0_i32_0 = arith.constant 0 : i32
    %c0_i32_1 = arith.constant 0 : i32
    return %c0_i32, %c0_i32_0 : i32, i32
  }
  func.func @transform_4(%arg0: i32) -> (i32, i32) {
    %c0_i32 = arith.constant 0 : i32
    %c0_i32_0 = arith.constant 0 : i32
    %c0_i32_1 = arith.constant 0 : i32
    return %c0_i32, %c0_i32_0 : i32, i32
  }
  func.func @transform_5(%arg0: i32) -> (i32, i32) {
    %c0_i32 = arith.constant 0 : i32
    %c0_i32_0 = arith.constant 0 : i32
    %c0_i32_1 = arith.constant 0 : i32
    return %c0_i32, %c0_i32_0 : i32, i32
  }
  func.func @transform_6(%arg0: i32) -> (i32, i32) {
    %c0_i32 = arith.constant 0 : i32
    %c0_i32_0 = arith.constant 0 : i32
    %c0_i32_1 = arith.constant 0 : i32
    return %c0_i32, %c0_i32_0 : i32, i32
  }
  func.func @transform_7(%arg0: i32) -> (i32, i32) {
    %c0_i32 = arith.constant 0 : i32
    %c0_i32_0 = arith.constant 0 : i32
    %c0_i32_1 = arith.constant 0 : i32
    return %c0_i32, %c0_i32_0 : i32, i32
  }
  func.func @transform_8(%arg0: i32) -> (i32, i32) {
    %c0_i32 = arith.constant 0 : i32
    %c0_i32_0 = arith.constant 0 : i32
    %c0_i32_1 = arith.constant 0 : i32
    return %c0_i32, %c0_i32_0 : i32, i32
  }
  func.func @transform_9(%arg0: i32) -> (i32, i32) {
    %c0_i32 = arith.constant 0 : i32
    %c0_i32_0 = arith.constant 0 : i32
    return %arg0, %c0_i32 : i32, i32
  }
}

</mosaic_0001>

<bundles_post_ra>
// kernel: mlp_forward.1
= control target key start
LH: loop header
LB: loop body
LE: loop exit
PB: predicated region body
PF: predicated region fallthrough
CT: control target
= control target key end

     0   :  { %14 = vsyncpa [#allocation3], 0  ;;  %v3237_v2 = vmov 0   ;;  %vm130_vm0 = vcmask 261120   ;;  %vm2484_vm1 = vcmask 130048   ;;  %s4491_s0 = inlined_call_operand.vmem [shape: f32[8,32], index: 0, kind: input, shape index: {}]   ;;  %s4492_s1 = inlined_call_operand.vmem [shape: bf16[32,512], index: 1, kind: input, shape index: {}]   ;;  %s4493_s2 = inlined_call_operand.vmem [shape: bf16[1,512], index: 2, kind: input, shape index: {}]   ;;  %s4494_s3 = inlined_call_operand.vmem [shape: bf16[512,256], index: 3, kind: input, shape index: {}]   ;;  %s4495_s4 = inlined_call_operand.vmem [shape: bf16[1,256], index: 4, kind: input, shape index: {}]   ;;  %s4496_s5 = inlined_call_operand.vmem [shape: bf16[256,128], index: 5, kind: input, shape index: {}]   ;;  %s4497_s6 = inlined_call_operand.vmem [shape: bf16[1,128], index: 6, kind: input, shape index: {}]   ;;  %s4498_s7 = inlined_call_operand.vmem [shape: bf16[128,16], index: 7, kind: input, shape index: {}]   ;;  %s4499_s8 = inlined_call_operand.vmem [shape: f32[1,16], index: 8, kind: input, shape index: {}]   ;;  %s4500_s9 = inlined_call_operand.hbm [shape: f32[8,16], index: 9, kind: output, shape index: {}]  }
   0x1   :  { %v2953_v0 = vld [vmem:[%s4492_s1 + $0x4] ss:$16 sps:$4 sm:$0xff]   ;;  %v2955_v1 = vld [vmem:[%s4492_s1] ss:$16 sps:$4 sm:$0xff]   ;;  %211 = vmatprep.mubr.bf16.mxu0 %v3237_v2  ;;  %331 = vmatprep.mubr.bf16.mxu1 %v3237_v2  ;;  %v35_v6 = vld [vmem:[%s4491_s0 + $0x8] sm:$0xff] }
   0x2   :  { %v2956_v3 = vld [vmem:[%s4492_s1 + $0x24] ss:$16 sps:$4 sm:$0xff]   ;;  %179 = vmatprep.subr.bf16.mxu0 %v2953_v0  ;;  %2880 = vmatprep.subr.bf16.mxu1 %v2953_v0  ;;  %v2958_v4 = vld [vmem:[%s4492_s1 + $0x20] ss:$16 sps:$4 sm:$0xff]   ;;  %v37_v9 = vld [vmem:[%s4491_s0 + $0x18] sm:$0xff] }
   0x3   :  { %180 = vmatpush1.bf16.msra.mxu0 %v2955_v1  ;;  %v34_v5 = vld [vmem:[%s4491_s0] sm:$0xff]  ;;  %2882 = vmatpush1.bf16.msra.mxu1 %v2955_v1  ;;  %v36_v8 = vld [vmem:[%s4491_s0 + $0x10] sm:$0xff]  ;;  %v59_v11 = vld [vmem:[%s4491_s0 + $0xc8] sm:$0xff] }
   0x4   :  { %181 = vmatprep.subr.bf16.mxu0 %v2956_v3  ;;  %2881 = vmatprep.subr.bf16.mxu1 %v2956_v3  ;;  %v3312_v7 = vpack.c.bf16 %v35_v6, %v34_v5  ;;  %v58_v10 = vld [vmem:[%s4491_s0 + $0xc0] sm:$0xff]  ;;  %v2959_v13 = vld [vmem:[%s4492_s1 + $0x8] ss:$16 sps:$4 sm:$0xff]   ;;  %v2961_v14 = vld [vmem:[%s4492_s1 + $0xc] ss:$16 sps:$4 sm:$0xff]   ;;  %v3342_v16 = vpack.c.bf16 %v37_v9, %v36_v8 }
   0x5   :  { %v3329_v12 = vpack.c.bf16 %v59_v11, %v58_v10  ;;  %v60_v15 = vld [vmem:[%s4491_s0 + $0xd0] sm:$0xff]  ;;  %v61_v17 = vld [vmem:[%s4491_s0 + $0xd8] sm:$0xff]  ;;  %v2965_v20 = vld [vmem:[%s4494_s3] ss:$8 sps:$4 sm:$0xff]  }
   0x6   :  { %v2962_v18 = vld [vmem:[%s4492_s1 + $0x28] ss:$16 sps:$4 sm:$0xff]   ;;  %v2964_v19 = vld [vmem:[%s4492_s1 + $0x2c] ss:$16 sps:$4 sm:$0xff]   ;;  %v3360_v22 = vpack.c.bf16 %v61_v17, %v60_v15  ;;  %v38_v24 = vld [vmem:[%s4491_s0 + $0x20] sm:$0xff] }
   0x7   :  { %182 = vmatpush1.bf16.msra.mxu0 %v2958_v4  ;;  %2883 = vmatpush1.bf16.msra.mxu1 %v2958_v4  ;;  %v2967_v21 = vld [vmem:[%s4494_s3 + $0x4] ss:$8 sps:$4 sm:$0xff]   ;;  %v2970_v23 = vld [vmem:[%s4494_s3 + $0x14] ss:$8 sps:$4 sm:$0xff]   ;;  %v2968_v26 = vld [vmem:[%s4494_s3 + $0x10] ss:$8 sps:$4 sm:$0xff]  }
   0x8   :  { %372 = vmatprep.subr.bf16.mxu1 %v2961_v14  ;;  %v39_v25 = vld [vmem:[%s4491_s0 + $0x28] sm:$0xff]  ;;  %1195 = vmatprep.subr.bf16.mxu0 %v2967_v21  ;;  %v62_v27 = vld [vmem:[%s4491_s0 + $0xe0] sm:$0xff]  ;;  %v2976_v33 = vld [vmem:[%s4494_s3 + $0x34] ss:$8 sps:$4 sm:$0xff]  }
   0x9   :  { %v2973_v28 = vld [vmem:[%s4494_s3 + $0x24] ss:$8 sps:$4 sm:$0xff]   ;;  %v3385_v29 = vpack.c.bf16 %v39_v25, %v38_v24  ;;  %v2971_v31 = vld [vmem:[%s4494_s3 + $0x20] ss:$8 sps:$4 sm:$0xff]   ;;  %v40_v34 = vld [vmem:[%s4491_s0 + $0x30] sm:$0xff] }
   0xa   :  { %2541 = vmatmul.mubr.msk.bf16.vlgmr.msra.gmra.mrb[0].mxu0 %vm130_vm0, %v3312_v7  ;;  %2553 = vmatmul.mubr.msk.bf16.vlgmr.msra.gmra.mrb[0].mxu1 %vm130_vm0, %v3329_v12  ;;  %v63_v30 = vld [vmem:[%s4491_s0 + $0xe8] sm:$0xff]  ;;  %v41_v35 = vld [vmem:[%s4491_s0 + $0x38] sm:$0xff]  ;;  %v64_v37 = vld [vmem:[%s4491_s0 + $0xf0] sm:$0xff] }
   0xb   :  { %221 = vmatprep.mubr.bf16.mxu0 %v3237_v2  ;;  %373 = vmatpush1.bf16.msra.mxu1 %v2959_v13  ;;  %v3394_v32 = vpack.c.bf16 %v63_v30, %v62_v27  ;;  %v2974_v36 = vld [vmem:[%s4494_s3 + $0x30] ss:$8 sps:$4 sm:$0xff]   ;;  %v2979_v38 = vld [vmem:[%s4494_s3 + $0x44] ss:$8 sps:$4 sm:$0xff]   ;;  %v3419_v39 = vpack.c.bf16 %v41_v35, %v40_v34  ;;  %v2977_v41 = vld [vmem:[%s4494_s3 + $0x40] ss:$8 sps:$4 sm:$0xff]  }
   0xc   :  { %341 = vmatprep.mubr.bf16.mxu1 %v3237_v2  ;;  %374 = vmatprep.subr.bf16.mxu1 %v2964_v19  ;;  %v65_v40 = vld [vmem:[%s4491_s0 + $0xf8] sm:$0xff]  ;;  %v42_v42 = vld [vmem:[%s4491_s0 + $0x40] sm:$0xff]  ;;  %v43_v43 = vld [vmem:[%s4491_s0 + $0x48] sm:$0xff] }
   0xd   :  { %1196 = vmatpush1.bf16.msra.mxu0 %v2965_v20  ;;  %v3434_v44 = vpack.c.bf16 %v65_v40, %v64_v37  ;;  %v2982_v45 = vld [vmem:[%s4494_s3 + $0x54] ss:$8 sps:$4 sm:$0xff]   ;;  %v2980_v46 = vld [vmem:[%s4494_s3 + $0x50] ss:$8 sps:$4 sm:$0xff]   ;;  %v2985_v47 = vld [vmem:[%s4494_s3 + $0x64] ss:$8 sps:$4 sm:$0xff]   ;;  %v3450_v48 = vpack.c.bf16 %v43_v43, %v42_v42 }
   0xe   :  { %1197 = vmatprep.subr.bf16.mxu0 %v2970_v23  ;;  %v2983_v49 = vld [vmem:[%s4494_s3 + $0x60] ss:$8 sps:$4 sm:$0xff]   ;;  %v2988_v50 = vld [vmem:[%s4494_s3 + $0x74] ss:$8 sps:$4 sm:$0xff]   ;;  %v2986_v53 = vld [vmem:[%s4494_s3 + $0x70] ss:$8 sps:$4 sm:$0xff]  }
   0xf   :  { %375 = vmatpush1.bf16.msra.mxu1 %v2962_v18  ;;  %v44_v51 = vld [vmem:[%s4491_s0 + $0x50] sm:$0xff]  ;;  %v45_v52 = vld [vmem:[%s4491_s0 + $0x58] sm:$0xff]  ;;  %v2991_v54 = vld [vmem:[%s4494_s3 + $0x84] ss:$8 sps:$4 sm:$0xff]  }
  0x10   :  { %v71_v55 = vpack.c.bf16 %v45_v52, %v44_v51  ;;  %v2989_v56 = vld [vmem:[%s4494_s3 + $0x80] ss:$8 sps:$4 sm:$0xff]   ;;  %v2994_v57 = vld [vmem:[%s4494_s3 + $0x94] ss:$8 sps:$4 sm:$0xff]   ;;  %v2992_v60 = vld [vmem:[%s4494_s3 + $0x90] ss:$8 sps:$4 sm:$0xff]  }
  0x11   :  { %1198 = vmatpush1.bf16.msra.mxu0 %v2968_v26  ;;  %v46_v58 = vld [vmem:[%s4491_s0 + $0x60] sm:$0xff]  ;;  %v47_v59 = vld [vmem:[%s4491_s0 + $0x68] sm:$0xff]  ;;  %v3000_v0 = vld [vmem:[%s4494_s3 + $0xb4] ss:$8 sps:$4 sm:$0xff]  }
  0x12   :  { %2542 = vmatmul.mubr.msk.bf16.gmra.mrb[4].mxu0 %vm130_vm0, %v3342_v16  ;;  %2554 = vmatmul.mubr.msk.bf16.gmra.mrb[4].mxu1 %vm130_vm0, %v3360_v22  ;;  %v2997_v61 = vld [vmem:[%s4494_s3 + $0xa4] ss:$8 sps:$4 sm:$0xff]   ;;  %v72_v62 = vpack.c.bf16 %v47_v59, %v46_v58  ;;  %v2995_v63 = vld [vmem:[%s4494_s3 + $0xa0] ss:$8 sps:$4 sm:$0xff]   ;;  %v48_v1 = vld [vmem:[%s4491_s0 + $0x70] sm:$0xff] }
  0x13   :  { %231 = vmatprep.mubr.bf16.mxu0 %v3237_v2  ;;  %351 = vmatprep.mubr.bf16.mxu1 %v3237_v2  ;;  %v49_v3 = vld [vmem:[%s4491_s0 + $0x78] sm:$0xff]  ;;  %v3003_v5 = vld [vmem:[%s4494_s3 + $0xc4] ss:$8 sps:$4 sm:$0xff]   ;;  %v3007_v15 = vld [vmem:[%s4494_s3 + $0xe0] ss:$8 sps:$4 sm:$0xff]  }
  0x14   :  { %1199 = vmatprep.subr.bf16.mxu0 %v2973_v28  ;;  %v2998_v4 = vld [vmem:[%s4494_s3 + $0xb0] ss:$8 sps:$4 sm:$0xff]   ;;  %v73_v6 = vpack.c.bf16 %v49_v3, %v48_v1  ;;  %v3006_v8 = vld [vmem:[%s4494_s3 + $0xd4] ss:$8 sps:$4 sm:$0xff]   ;;  %v50_v9 = vld [vmem:[%s4491_s0 + $0x80] sm:$0xff] }
  0x15   :  { %1200 = vmatpush1.bf16.msra.mxu0 %v2971_v31  ;;  %v51_v10 = vld [vmem:[%s4491_s0 + $0x88] sm:$0xff]  ;;  %v3004_v11 = vld [vmem:[%s4494_s3 + $0xd0] ss:$8 sps:$4 sm:$0xff]   ;;  %v54_v19 = vld [vmem:[%s4491_s0 + $0xa0] sm:$0xff]  ;;  %v642_v31 = vlaneseq }
  0x16   :  { %1201 = vmatprep.subr.bf16.mxu0 %v2976_v33  ;;  %v3009_v13 = vld [vmem:[%s4494_s3 + $0xe4] ss:$8 sps:$4 sm:$0xff]   ;;  %v74_v14 = vpack.c.bf16 %v51_v10, %v50_v9  ;;  %v53_v17 = vld [vmem:[%s4491_s0 + $0x98] sm:$0xff]  ;;  %v56_v23 = vld [vmem:[%s4491_s0 + $0xb0] sm:$0xff] }
  0x17   :  { %v55_v20 = vld [vmem:[%s4491_s0 + $0xa8] sm:$0xff]  ;;  %v57_v24 = vld [vmem:[%s4491_s0 + $0xb8] sm:$0xff]  ;;  %v2573_v34 = vld.sshfl [vmem:[%s4493_s2] sm:$0x33 pattern:$0x75316420] }
  0x18   :  { %v76_v21 = vpack.c.bf16 %v55_v20, %v54_v19  ;;  %v77_v25 = vpack.c.bf16 %v57_v24, %v56_v23  ;;  %v3012_v26 = vld [vmem:[%s4494_s3 + $0xf4] ss:$8 sps:$4 sm:$0xff]   ;;  %v3010_v27 = vld [vmem:[%s4494_s3 + $0xf0] ss:$8 sps:$4 sm:$0xff]   ;;  %v3015_v28 = vld [vmem:[%s4494_s3 + $0x104] ss:$8 sps:$4 sm:$0xff]   ;;  %v638_v35 = vcombine.high %v2573_v34, %v2573_v34 }
  0x19   :  { %1202 = vmatpush1.bf16.msra.mxu0 %v2974_v36  ;;  %v3013_v58 = vld [vmem:[%s4494_s3 + $0x100] ss:$8 sps:$4 sm:$0xff]   ;;  %v3024_v19 = vld [vmem:[%s4494_s3 + $0x134] ss:$8 sps:$4 sm:$0xff]  }
  0x1a   :  { %2543 = vmatmul.mubr.msk.bf16.gmra.mrb[8].mxu0 %vm130_vm0, %v3385_v29  ;;  %2555 = vmatmul.mubr.msk.bf16.gmra.mrb[8].mxu1 %vm130_vm0, %v3394_v32 }
  0x1b   :  { %241 = vmatprep.mubr.bf16.mxu0 %v3237_v2  ;;  %361 = vmatprep.mubr.bf16.mxu1 %v3237_v2 }
  0x1c   :  { %1203 = vmatprep.subr.bf16.mxu0 %v2979_v38 }
  0x1d   :  { %1204 = vmatpush1.bf16.msra.mxu0 %v2977_v41 }
  0x1e   :  { %1205 = vmatprep.subr.bf16.mxu0 %v2982_v45 }
  0x21   :  { %1206 = vmatpush1.bf16.msra.mxu0 %v2980_v46 }
  0x22   :  { %2544 = vmatmul.mubr.msk.bf16.gmra.mrb[12].mxu0 %vm130_vm0, %v3419_v39  ;;  %2556 = vmatmul.mubr.msk.bf16.gmra.mrb[12].mxu1 %vm130_vm0, %v3434_v44 }
  0x23   :  { %251 = vmatprep.mubr.bf16.mxu0 %v3237_v2  ;;  %404 = vmatprep.mubr.bf16.mxu1 %v3237_v2 }
  0x24   :  { %1207 = vmatprep.subr.bf16.mxu0 %v2985_v47 }
  0x25   :  { %1208 = vmatpush1.bf16.msra.mxu0 %v2983_v49 }
  0x26   :  { %1209 = vmatprep.subr.bf16.mxu0 %v2988_v50 }
  0x29   :  { %1210 = vmatpush1.bf16.msra.mxu0 %v2986_v53 }
  0x2a   :  { %2545 = vmatmul.mubr.msk.bf16.gmra.mrb[16].mxu0 %vm130_vm0, %v3450_v48  ;;  %2557 = vmatmul.mubr.msk.bf16.vlgmr.msra.gmra.mrb[16].mxu1 %vm130_vm0, %v3312_v7  ;;  %v3001_v7 = vld [vmem:[%s4494_s3 + $0xc0] ss:$8 sps:$4 sm:$0xff]  }
  0x2b   :  { %261 = vmatprep.mubr.bf16.mxu0 %v3237_v2  ;;  %414 = vmatprep.mubr.bf16.mxu1 %v3237_v2 }
  0x2c   :  { %1211 = vmatprep.subr.bf16.mxu0 %v2991_v54 }
  0x2d   :  { %1212 = vmatpush1.bf16.msra.mxu0 %v2989_v56 }
  0x2e   :  { %1213 = vmatprep.subr.bf16.mxu0 %v2994_v57 }
  0x31   :  { %1214 = vmatpush1.bf16.msra.mxu0 %v2992_v60 }
  0x32   :  { %2546 = vmatmul.mubr.msk.bf16.gmra.mrb[20].mxu0 %vm130_vm0, %v71_v55  ;;  %2558 = vmatmul.mubr.msk.bf16.gmra.mrb[20].mxu1 %vm130_vm0, %v3342_v16  ;;  %v52_v16 = vld [vmem:[%s4491_s0 + $0x90] sm:$0xff] }
  0x33   :  { %271 = vmatprep.mubr.bf16.mxu0 %v3237_v2  ;;  %424 = vmatprep.mubr.bf16.mxu1 %v3237_v2  ;;  %v75_v18 = vpack.c.bf16 %v53_v17, %v52_v16  ;;  %v3019_v16 = vld [vmem:[%s4494_s3 + $0x120] ss:$8 sps:$4 sm:$0xff]  }
  0x34   :  { %1215 = vmatprep.subr.bf16.mxu0 %v2997_v61  ;;  %v3018_v61 = vld [vmem:[%s4494_s3 + $0x114] ss:$8 sps:$4 sm:$0xff]  }
  0x35   :  { %1216 = vmatpush1.bf16.msra.mxu0 %v2995_v63 }
  0x36   :  { %1217 = vmatprep.subr.bf16.mxu0 %v3000_v0 }
  0x39   :  { %1218 = vmatpush1.bf16.msra.mxu0 %v2998_v4  ;;  %v3016_v4 = vld [vmem:[%s4494_s3 + $0x110] ss:$8 sps:$4 sm:$0xff]  }
  0x3a   :  { %2547 = vmatmul.mubr.msk.bf16.gmra.mrb[24].mxu0 %vm130_vm0, %v72_v62  ;;  %2559 = vmatmul.mubr.msk.bf16.gmra.mrb[24].mxu1 %vm130_vm0, %v3385_v29  ;;  %v3238_v29 = vmov 1966171168  }
  0x3b   :  { %281 = vmatprep.mubr.bf16.mxu0 %v3237_v2  ;;  %434 = vmatprep.mubr.bf16.mxu1 %v3237_v2  ;;  %v640_v30 = vunpack.c.l.s4 %v3238_v29  ;;  %v3027_v29 = vld [vmem:[%s4494_s3 + $0x144] ss:$8 sps:$4 sm:$0xff]  }
  0x3c   :  { %1219 = vmatprep.subr.bf16.mxu0 %v3003_v5 }
  0x3d   :  { %1220 = vmatpush1.bf16.msra.mxu0 %v3001_v7  ;;  %v641_v33 = vunpack.c.0.s8 %v640_v30  ;;  %v3021_v7 = vld [vmem:[%s4494_s3 + $0x124] ss:$8 sps:$4 sm:$0xff]  }
  0x3e   :  { %1221 = vmatprep.subr.bf16.mxu0 %v3006_v8 }
  0x41   :  { %1222 = vmatpush1.bf16.msra.mxu0 %v3004_v11 }
  0x42   :  { %2548 = vmatmul.mubr.msk.bf16.gmra.mrb[28].mxu0 %vm130_vm0, %v73_v6  ;;  %2560 = vmatmul.mubr.msk.bf16.gmra.mrb[28].mxu1 %vm130_vm0, %v3419_v39 }
  0x43   :  { %291 = vmatprep.mubr.bf16.mxu0 %v3237_v2  ;;  %444 = vmatprep.mubr.bf16.mxu1 %v3237_v2 }
  0x44   :  { %1223 = vmatprep.subr.bf16.mxu0 %v3009_v13 }
  0x45   :  { %1224 = vmatpush1.bf16.msra.mxu0 %v3007_v15 }
  0x46   :  { %1225 = vmatprep.subr.bf16.mxu0 %v3012_v26  ;;  %v3022_v26 = vld [vmem:[%s4494_s3 + $0x130] ss:$8 sps:$4 sm:$0xff]  }
  0x49   :  { %1226 = vmatpush1.bf16.msra.mxu0 %v3010_v27 }
  0x4a   :  { %2549 = vmatmul.mubr.msk.bf16.gmra.mrb[32].mxu0 %vm130_vm0, %v74_v14  ;;  %2561 = vmatmul.mubr.msk.bf16.gmra.mrb[32].mxu1 %vm130_vm0, %v3450_v48 }
  0x4b   :  { %301 = vmatprep.mubr.bf16.mxu0 %v3237_v2  ;;  %454 = vmatprep.mubr.bf16.mxu1 %v3237_v2 }
  0x4c   :  { %1388 = vmatprep.subr.bf16.mxu0 %v3015_v28 }
  0x52   :  { %2550 = vmatmul.mubr.msk.bf16.gmra.mrb[36].mxu0 %vm130_vm0, %v75_v18  ;;  %2562 = vmatmul.mubr.msk.bf16.gmra.mrb[36].mxu1 %vm130_vm0, %v71_v55 }
  0x53   :  { %311 = vmatprep.mubr.bf16.mxu0 %v3237_v2  ;;  %464 = vmatprep.mubr.bf16.mxu1 %v3237_v2 }
  0x5a   :  { %2551 = vmatmul.mubr.msk.bf16.gmra.mrb[40].mxu0 %vm130_vm0, %v76_v21  ;;  %2563 = vmatmul.mubr.msk.bf16.gmra.mrb[40].mxu1 %vm130_vm0, %v72_v62 }
  0x5b   :  { %321 = vmatprep.mubr.bf16.mxu0 %v3237_v2  ;;  %474 = vmatprep.mubr.bf16.mxu1 %v3237_v2 }
  0x62   :  { %2552 = vmatmul.mubr.msk.bf16.gmra.mrb[44].mxu0 %vm130_vm0, %v77_v25  ;;  %2564 = vmatmul.mubr.msk.bf16.gmra.mrb[44].mxu1 %vm130_vm0, %v73_v6 }
  0x63   :  { %484 = vmatprep.mubr.bf16.mxu1 %v3237_v2 }
  0x6a   :  { %2565 = vmatmul.mubr.msk.bf16.gmra.mrb[48].mxu1 %vm130_vm0, %v74_v14 }
  0x6b   :  { %494 = vmatprep.mubr.bf16.mxu1 %v3237_v2 }
  0x72   :  { %2566 = vmatmul.mubr.msk.bf16.gmra.mrb[52].mxu1 %vm130_vm0, %v75_v18 }
  0x73   :  { %504 = vmatprep.mubr.bf16.mxu1 %v3237_v2 }
  0x7a   :  { %2567 = vmatmul.mubr.msk.bf16.gmra.mrb[56].mxu1 %vm130_vm0, %v76_v21 }
  0x7b   :  { %514 = vmatprep.mubr.bf16.mxu1 %v3237_v2 }
  0x82   :  { %2568 = vmatmul.mubr.msk.bf16.gmra.mrb[60].mxu1 %vm130_vm0, %v77_v25 }
  0x83   :  { %524 = vmatprep.mubr.bf16.mxu1 %v3237_v2 }
  0x8a   :  { %2569 = vmatmul.mubr.msk.bf16.gmra.mrb[64].mxu1 %vm130_vm0, %v3329_v12  ;;  %v643_v12 = vshrl.u32 %v642_v31, 7 }
  0x8b   :  { %534 = vmatprep.mubr.bf16.mxu1 %v3237_v2 }
  0x8c   :  { %v3624_v38 = vsub.s32 0, %v643_v12 }
  0x92   :  { %2570 = vmatmul.mubr.msk.bf16.gmra.mrb[68].mxu1 %vm130_vm0, %v3360_v22  ;;  %v3614_v22 = vsub.s32 %v641_v33, %v643_v12 }
  0x93   :  { %544 = vmatprep.mubr.bf16.mxu1 %v3237_v2 }
  0x94   :  { %4504 = vst [vmem:[#allocation5_spill] sm:$0xff] %v3614_v22  ;;  %v3617_v36 = vrot.slane %v2573_v34, %v3614_v22 }
  0x96   :  { %v656_v37 = vpack.i.b16 %v3617_v36, %v3617_v36 }
  0x98   :  { %v3629_v42 = vrot.slane %v656_v37, %v3624_v38 }
  0x9a   :  { %2571 = vmatmul.mubr.msk.bf16.gmra.mrb[72].mxu1 %vm130_vm0, %v3394_v32  ;;  %v3620_v32 = vrot.slane %v638_v35, %v3614_v22 }
  0x9b   :  { %554 = vmatprep.mubr.bf16.mxu1 %v3237_v2 }
  0x9c   :  { %v663_v39 = vpack.i.b16 %v3620_v32, %v3620_v32 }
  0xa2   :  { %2572 = vmatmul.mubr.msk.bf16.gmra.mrb[76].mxu1 %vm130_vm0, %v3434_v44  ;;  %v3632_v44 = vrot.slane %v663_v39, %v3624_v38  ;;  %v3025_v39 = vld [vmem:[%s4494_s3 + $0x140] ss:$8 sps:$4 sm:$0xff]  }
  0xdd   :  { %v213_v40 = vpop.f32.mrb[0].mxu0  ;;  %v3634_v47 = vpop.f32.mrb[0].mxu1 }
  0xde   :  { %v215_v41 = vpop.f32.mrb[1].mxu0  ;;  %v3636_v49 = vpop.f32.mrb[1].mxu1 }
  0xdf   :  { %v217_v43 = vpop.f32.mrb[2].mxu0  ;;  %v3639_v51 = vpop.f32.mrb[2].mxu1 }
  0xe0   :  { %v565_v45 = vpack.c.bf16 %v217_v43, %v213_v40  ;;  %v219_v46 = vpop.f32.mrb[3].mxu0  ;;  %v3644_v54 = vpop.f32.mrb[3].mxu1  ;;  %v3030_v43 = vld [vmem:[%s4494_s3 + $0x154] ss:$8 sps:$4 sm:$0xff]  }
  0xe1   :  { %v566_v48 = vpack.c.bf16 %v219_v46, %v215_v41 }
  0xe2   :  { %v683_v50 = vadd.bf16 %v3629_v42, %v565_v45 }
  0xe3   :  { %v684_v52 = vadd.bf16 %v3632_v44, %v566_v48 }
  0xe4   :  { %v747_v59 = vmax.bf16 %v3237_v2, %v683_v50 }
  0xe5   :  { %v223_v56 = vpop.f32.mrb[4].mxu0  ;;  %v748_v57 = vmax.bf16 %v3237_v2, %v684_v52  ;;  %v3656_v1 = vpop.f32.mrb[4].mxu1 }
  0xe6   :  { %v225_v60 = vpop.f32.mrb[5].mxu0  ;;  %v3661_v5 = vpop.f32.mrb[5].mxu1 }
  0xe7   :  { %v227_v62 = vpop.f32.mrb[6].mxu0  ;;  %1227 = vmatprep.mubr.bf16.mxu0 %v748_v57  ;;  %v3667_v8 = vpop.f32.mrb[6].mxu1 }
  0xe8   :  { %v569_v63 = vpack.c.bf16 %v227_v62, %v223_v56  ;;  %v229_v0 = vpop.f32.mrb[7].mxu0  ;;  %1228 = vmatmul.mubr.bf16.vlgmr.msra.gmra.mrb[48].mxu0 %v747_v59  ;;  %v3672_v11 = vpop.f32.mrb[7].mxu1  ;;  %v3028_v56 = vld [vmem:[%s4494_s3 + $0x150] ss:$8 sps:$4 sm:$0xff]   ;;  %v3033_v59 = vld [vmem:[%s4494_s3 + $0x164] ss:$8 sps:$4 sm:$0xff]  }
  0xe9   :  { %v570_v3 = vpack.c.bf16 %v229_v0, %v225_v60  ;;  %1389 = vmatpush1.bf16.msra.mxu0 %v3013_v58 }
  0xea   :  { %v687_v6 = vadd.bf16 %v3629_v42, %v569_v63  ;;  %1390 = vmatprep.subr.bf16.mxu0 %v3018_v61 }
  0xeb   :  { %v688_v9 = vadd.bf16 %v3632_v44, %v570_v3 }
  0xec   :  { %v751_v18 = vmax.bf16 %v3237_v2, %v687_v6  ;;  %v3031_v6 = vld [vmem:[%s4494_s3 + $0x160] ss:$8 sps:$4 sm:$0xff]  }
  0xed   :  { %v233_v14 = vpop.f32.mrb[8].mxu0  ;;  %v752_v15 = vmax.bf16 %v3237_v2, %v688_v9  ;;  %1391 = vmatpush1.bf16.msra.mxu0 %v3016_v4  ;;  %v3684_v24 = vpop.f32.mrb[8].mxu1 }
  0xee   :  { %v235_v17 = vpop.f32.mrb[9].mxu0  ;;  %1392 = vmatprep.subr.bf16.mxu0 %v3021_v7  ;;  %v3689_v27 = vpop.f32.mrb[9].mxu1 }
  0xef   :  { %v237_v20 = vpop.f32.mrb[10].mxu0  ;;  %1237 = vmatprep.mubr.bf16.mxu0 %v752_v15  ;;  %v3695_v30 = vpop.f32.mrb[10].mxu1 }
  0xf0   :  { %v573_v21 = vpack.c.bf16 %v237_v20, %v233_v14  ;;  %v239_v23 = vpop.f32.mrb[11].mxu0  ;;  %1238 = vmatmul.mubr.bf16.gmra.mrb[52].mxu0 %v751_v18  ;;  %v3700_v12 = vpop.f32.mrb[11].mxu1  ;;  %v3036_v14 = vld [vmem:[%s4494_s3 + $0x174] ss:$8 sps:$4 sm:$0xff]   ;;  %v3034_v20 = vld [vmem:[%s4494_s3 + $0x170] ss:$8 sps:$4 sm:$0xff]  }
  0xf1   :  { %v574_v25 = vpack.c.bf16 %v239_v23, %v235_v17  ;;  %1393 = vmatpush1.bf16.msra.mxu0 %v3019_v16 }
  0xf2   :  { %v691_v28 = vadd.bf16 %v3629_v42, %v573_v21  ;;  %1394 = vmatprep.subr.bf16.mxu0 %v3024_v19 }
  0xf3   :  { %v692_v31 = vadd.bf16 %v3632_v44, %v574_v25  ;;  %v3039_v25 = vld [vmem:[%s4494_s3 + $0x184] ss:$8 sps:$4 sm:$0xff]  }
  0xf4   :  { %v755_v41 = vmax.bf16 %v3237_v2, %v691_v28 }
  0xf5   :  { %v243_v35 = vpop.f32.mrb[12].mxu0  ;;  %v756_v37 = vmax.bf16 %v3237_v2, %v692_v31  ;;  %1395 = vmatpush1.bf16.msra.mxu0 %v3022_v26  ;;  %v3712_v50 = vpop.f32.mrb[12].mxu1 }
  0xf6   :  { %v245_v40 = vpop.f32.mrb[13].mxu0  ;;  %1396 = vmatprep.subr.bf16.mxu0 %v3027_v29  ;;  %v3717_v57 = vpop.f32.mrb[13].mxu1 }
  0xf7   :  { %v247_v45 = vpop.f32.mrb[14].mxu0  ;;  %1247 = vmatprep.mubr.bf16.mxu0 %v756_v37  ;;  %v3723_v60 = vpop.f32.mrb[14].mxu1 }
  0xf8   :  { %v577_v46 = vpack.c.bf16 %v247_v45, %v243_v35  ;;  %v249_v48 = vpop.f32.mrb[15].mxu0  ;;  %1248 = vmatmul.mubr.bf16.gmra.mrb[56].mxu0 %v755_v41  ;;  %v3728_v63 = vpop.f32.mrb[15].mxu1  ;;  %v3042_v45 = vld [vmem:[%s4494_s3 + $0x194] ss:$8 sps:$4 sm:$0xff]  }
  0xf9   :  { %v578_v52 = vpack.c.bf16 %v249_v48, %v245_v40  ;;  %1397 = vmatpush1.bf16.msra.mxu0 %v3025_v39  ;;  %v3037_v40 = vld [vmem:[%s4494_s3 + $0x180] ss:$8 sps:$4 sm:$0xff]  }
  0xfa   :  { %v695_v58 = vadd.bf16 %v3629_v42, %v577_v46  ;;  %1398 = vmatprep.subr.bf16.mxu0 %v3030_v43 }
  0xfb   :  { %v696_v61 = vadd.bf16 %v3632_v44, %v578_v52 }
  0xfc   :  { %v759_v9 = vmax.bf16 %v3237_v2, %v695_v58 }
  0xfd   :  { %v253_v3 = vpop.f32.mrb[16].mxu0  ;;  %v760_v4 = vmax.bf16 %v3237_v2, %v696_v61  ;;  %1399 = vmatpush1.bf16.msra.mxu0 %v3028_v56  ;;  %v3740_v18 = vpop.f32.mrb[16].mxu1 }
  0xfe   :  { %v255_v7 = vpop.f32.mrb[17].mxu0  ;;  %1400 = vmatprep.subr.bf16.mxu0 %v3033_v59  ;;  %v3745_v21 = vpop.f32.mrb[17].mxu1  ;;  %v3040_v59 = vld [vmem:[%s4494_s3 + $0x190] ss:$8 sps:$4 sm:$0xff]  }
  0xff   :  { %v257_v15 = vpop.f32.mrb[18].mxu0  ;;  %1257 = vmatprep.mubr.bf16.mxu0 %v760_v4  ;;  %v3751_v26 = vpop.f32.mrb[18].mxu1  ;;  %v3045_v4 = vld [vmem:[%s4494_s3 + $0x1a4] ss:$8 sps:$4 sm:$0xff]  }
 0x100   :  { %v581_v16 = vpack.c.bf16 %v257_v15, %v253_v3  ;;  %v259_v17 = vpop.f32.mrb[19].mxu0  ;;  %1258 = vmatmul.mubr.bf16.gmra.mrb[60].mxu0 %v759_v9  ;;  %v3756_v31 = vpop.f32.mrb[19].mxu1 }
 0x101   :  { %v582_v19 = vpack.c.bf16 %v259_v17, %v255_v7  ;;  %1401 = vmatpush1.bf16.msra.mxu0 %v3031_v6 }
 0x102   :  { %v699_v23 = vadd.bf16 %v3629_v42, %v581_v16  ;;  %1402 = vmatprep.subr.bf16.mxu0 %v3036_v14 }
 0x103   :  { %v700_v28 = vadd.bf16 %v3632_v44, %v582_v19  ;;  %v3043_v19 = vld [vmem:[%s4494_s3 + $0x1a0] ss:$8 sps:$4 sm:$0xff]  }
 0x104   :  { %v763_v43 = vmax.bf16 %v3237_v2, %v699_v23 }
 0x105   :  { %v263_v37 = vpop.f32.mrb[20].mxu0  ;;  %v764_v39 = vmax.bf16 %v3237_v2, %v700_v28  ;;  %1403 = vmatpush1.bf16.msra.mxu0 %v3034_v20  ;;  %v3768_v56 = vpop.f32.mrb[20].mxu1 }
 0x106   :  { %v265_v41 = vpop.f32.mrb[21].mxu0  ;;  %1404 = vmatprep.subr.bf16.mxu0 %v3039_v25  ;;  %v3773_v61 = vpop.f32.mrb[21].mxu1  ;;  %v3048_v25 = vld [vmem:[%s4494_s3 + $0x1b4] ss:$8 sps:$4 sm:$0xff]  }
 0x107   :  { %v267_v46 = vpop.f32.mrb[22].mxu0  ;;  %1267 = vmatprep.mubr.bf16.mxu0 %v764_v39  ;;  %v3779_v6 = vpop.f32.mrb[22].mxu1 }
 0x108   :  { %v585_v48 = vpack.c.bf16 %v267_v46, %v263_v37  ;;  %v269_v52 = vpop.f32.mrb[23].mxu0  ;;  %1268 = vmatmul.mubr.bf16.gmra.mrb[64].mxu0 %v763_v43  ;;  %v3784_v14 = vpop.f32.mrb[23].mxu1  ;;  %v3046_v43 = vld [vmem:[%s4494_s3 + $0x1b0] ss:$8 sps:$4 sm:$0xff]  }
 0x109   :  { %v586_v58 = vpack.c.bf16 %v269_v52, %v265_v41  ;;  %1405 = vmatpush1.bf16.msra.mxu0 %v3037_v40 }
 0x10a   :  { %v703_v3 = vadd.bf16 %v3629_v42, %v585_v48  ;;  %1406 = vmatprep.subr.bf16.mxu0 %v3042_v45  ;;  %v3051_v48 = vld [vmem:[%s4494_s3 + $0x1c4] ss:$8 sps:$4 sm:$0xff]  }
 0x10b   :  { %v704_v7 = vadd.bf16 %v3632_v44, %v586_v58 }
 0x10c   :  { %v767_v23 = vmax.bf16 %v3237_v2, %v703_v3 }
 0x10d   :  { %v273_v16 = vpop.f32.mrb[24].mxu0  ;;  %v768_v17 = vmax.bf16 %v3237_v2, %v704_v7  ;;  %1407 = vmatpush1.bf16.msra.mxu0 %v3040_v59  ;;  %v3796_v40 = vpop.f32.mrb[24].mxu1 }
 0x10e   :  { %v275_v20 = vpop.f32.mrb[25].mxu0  ;;  %1408 = vmatprep.subr.bf16.mxu0 %v3045_v4  ;;  %v3801_v45 = vpop.f32.mrb[25].mxu1 }
 0x10f   :  { %v277_v28 = vpop.f32.mrb[26].mxu0  ;;  %1277 = vmatprep.mubr.bf16.mxu0 %v768_v17  ;;  %v3807_v52 = vpop.f32.mrb[26].mxu1  ;;  %v3049_v17 = vld [vmem:[%s4494_s3 + $0x1c0] ss:$8 sps:$4 sm:$0xff]  }
 0x110   :  { %v589_v37 = vpack.c.bf16 %v277_v28, %v273_v16  ;;  %v279_v39 = vpop.f32.mrb[27].mxu0  ;;  %1278 = vmatmul.mubr.bf16.gmra.mrb[68].mxu0 %v767_v23  ;;  %v3812_v3 = vpop.f32.mrb[27].mxu1  ;;  %v3054_v23 = vld [vmem:[%s4494_s3 + $0x1d4] ss:$8 sps:$4 sm:$0xff]  }
 0x111   :  { %v590_v41 = vpack.c.bf16 %v279_v39, %v275_v20  ;;  %1409 = vmatpush1.bf16.msra.mxu0 %v3043_v19 }
 0x112   :  { %v707_v46 = vadd.bf16 %v3629_v42, %v589_v37  ;;  %1410 = vmatprep.subr.bf16.mxu0 %v3048_v25 }
 0x113   :  { %v708_v58 = vadd.bf16 %v3632_v44, %v590_v41 }
 0x114   :  { %v771_v20 = vmax.bf16 %v3237_v2, %v707_v46 }
 0x115   :  { %v283_v7 = vpop.f32.mrb[28].mxu0  ;;  %v772_v16 = vmax.bf16 %v3237_v2, %v708_v58  ;;  %1411 = vmatpush1.bf16.msra.mxu0 %v3046_v43  ;;  %v3824_v39 = vpop.f32.mrb[28].mxu1  ;;  %v3052_v43 = vld [vmem:[%s4494_s3 + $0x1d0] ss:$8 sps:$4 sm:$0xff]  }
 0x116   :  { %v285_v19 = vpop.f32.mrb[29].mxu0  ;;  %1412 = vmatprep.subr.bf16.mxu0 %v3051_v48  ;;  %v3829_v58 = vpop.f32.mrb[29].mxu1  ;;  %v3057_v48 = vld [vmem:[%s4494_s3 + $0x1e4] ss:$8 sps:$4 sm:$0xff]  }
 0x117   :  { %v287_v25 = vpop.f32.mrb[30].mxu0  ;;  %1287 = vmatprep.mubr.bf16.mxu0 %v772_v16 }
 0x118   :  { %v593_v28 = vpack.c.bf16 %v287_v25, %v283_v7  ;;  %v289_v37 = vpop.f32.mrb[31].mxu0  ;;  %1288 = vmatmul.mubr.bf16.gmra.mrb[72].mxu0 %v771_v20  ;;  %v3835_v7 = vpop.f32.mrb[30].mxu1 }
 0x119   :  { %v594_v41 = vpack.c.bf16 %v289_v37, %v285_v19  ;;  %1413 = vmatpush1.bf16.msra.mxu0 %v3049_v17  ;;  %v3840_v19 = vpop.f32.mrb[31].mxu1 }
 0x11a   :  { %v711_v46 = vadd.bf16 %v3629_v42, %v593_v28  ;;  %1414 = vmatprep.subr.bf16.mxu0 %v3054_v23  ;;  %v3055_v23 = vld [vmem:[%s4494_s3 + $0x1e0] ss:$8 sps:$4 sm:$0xff]  }
 0x11b   :  { %v712_v16 = vadd.bf16 %v3632_v44, %v594_v41  ;;  %v3060_v41 = vld [vmem:[%s4494_s3 + $0x1f4] ss:$8 sps:$4 sm:$0xff]  }
 0x11c   :  { %v775_v59 = vmax.bf16 %v3237_v2, %v711_v46 }
 0x11d   :  { %v293_v25 = vpop.f32.mrb[32].mxu0  ;;  %v776_v28 = vmax.bf16 %v3237_v2, %v712_v16  ;;  %1415 = vmatpush1.bf16.msra.mxu0 %v3052_v43  ;;  %v3852_v4 = vpop.f32.mrb[32].mxu1  ;;  %v3058_v16 = vld [vmem:[%s4494_s3 + $0x1f0] ss:$8 sps:$4 sm:$0xff]  }
 0x11e   :  { %v295_v37 = vpop.f32.mrb[33].mxu0  ;;  %1416 = vmatprep.subr.bf16.mxu0 %v3057_v48  ;;  %v3857_v29 = vpop.f32.mrb[33].mxu1 }
 0x11f   :  { %v297_v17 = vpop.f32.mrb[34].mxu0  ;;  %1297 = vmatprep.mubr.bf16.mxu0 %v776_v28  ;;  %v3860_v48 = vpop.f32.mrb[34].mxu1 }
 0x120   :  { %v597_v9 = vpack.c.bf16 %v297_v17, %v293_v25  ;;  %v299_v20 = vpop.f32.mrb[35].mxu0  ;;  %1298 = vmatmul.mubr.bf16.gmra.mrb[76].mxu0 %v775_v59  ;;  %v3865_v17 = vpop.f32.mrb[35].mxu1 }
 0x121   :  { %v598_v43 = vpack.c.bf16 %v299_v20, %v295_v37  ;;  %1417 = vmatpush1.bf16.msra.mxu0 %v3055_v23 }
 0x122   :  { %v715_v46 = vadd.bf16 %v3629_v42, %v597_v9  ;;  %1418 = vmatprep.subr.bf16.mxu0 %v3060_v41 }
 0x123   :  { %v716_v28 = vadd.bf16 %v3632_v44, %v598_v43 }
 0x124   :  { %v779_v9 = vmax.bf16 %v3237_v2, %v715_v46 }
 0x125   :  { %v303_v25 = vpop.f32.mrb[36].mxu0  ;;  %v780_v23 = vmax.bf16 %v3237_v2, %v716_v28  ;;  %1419 = vmatpush1.bf16.msra.mxu0 %v3058_v16  ;;  %v3871_v43 = vpop.f32.mrb[36].mxu1 }
 0x126   :  { %v305_v37 = vpop.f32.mrb[37].mxu0  ;;  %v3873_v35 = vpop.f32.mrb[37].mxu1 }
 0x127   :  { %v307_v41 = vpop.f32.mrb[38].mxu0  ;;  %1307 = vmatprep.mubr.bf16.mxu0 %v780_v23  ;;  %v3876_v20 = vpop.f32.mrb[38].mxu1 }
 0x128   :  { %v601_v15 = vpack.c.bf16 %v307_v41, %v303_v25  ;;  %v309_v62 = vpop.f32.mrb[39].mxu0  ;;  %1308 = vmatmul.mubr.bf16.gmra.mrb[80].mxu0 %v779_v9  ;;  %v3881_v46 = vpop.f32.mrb[39].mxu1 }
 0x129   :  { %v602_v59 = vpack.c.bf16 %v309_v62, %v305_v37 }
 0x12a   :  { %v719_v33 = vadd.bf16 %v3629_v42, %v601_v15 }
 0x12b   :  { %v720_v28 = vadd.bf16 %v3632_v44, %v602_v59 }
 0x12c   :  { %v783_v37 = vmax.bf16 %v3237_v2, %v719_v33 }
 0x12d   :  { %v313_v23 = vpop.f32.mrb[40].mxu0  ;;  %v784_v9 = vmax.bf16 %v3237_v2, %v720_v28  ;;  %v3887_v59 = vpop.f32.mrb[40].mxu1  ;;  %v4506_v28 = vpack.c.bf16 %v3644_v54, %v3636_v49 }
 0x12e   :  { %v315_v62 = vpop.f32.mrb[41].mxu0  ;;  %4505 = vst [vmem:[#allocation6_spill] sm:$0xff] %v3887_v59  ;;  %v3889_v16 = vpop.f32.mrb[41].mxu1 }
 0x12f   :  { %v317_v41 = vpop.f32.mrb[42].mxu0  ;;  %1317 = vmatprep.mubr.bf16.mxu0 %v784_v9  ;;  %v3892_v53 = vpop.f32.mrb[42].mxu1  ;;  %v732_v22 = vadd.bf16 %v3632_v44, %v4506_v28 }
 0x130   :  { %v605_v15 = vpack.c.bf16 %v317_v41, %v313_v23  ;;  %v319_v0 = vpop.f32.mrb[43].mxu0  ;;  %1318 = vmatmul.mubr.bf16.gmra.mrb[84].mxu0 %v783_v37  ;;  %v3897_v33 = vpop.f32.mrb[43].mxu1 }
 0x131   :  { %v606_v10 = vpack.c.bf16 %v319_v0, %v315_v62  ;;  %v796_v54 = vmax.bf16 %v3237_v2, %v732_v22  ;;  %v3062_v22 = vld [vmem:[%s4496_s5] sm:$0xff]  }
 0x132   :  { %v723_v34 = vadd.bf16 %v3629_v42, %v605_v15 }
 0x133   :  { %v724_v25 = vadd.bf16 %v3632_v44, %v606_v10 }
 0x134   :  { %v787_v62 = vmax.bf16 %v3237_v2, %v723_v34 }
 0x135   :  { %v323_v9 = vpop.f32.mrb[44].mxu0  ;;  %v788_v37 = vmax.bf16 %v3237_v2, %v724_v25  ;;  %v3903_v10 = vpop.f32.mrb[44].mxu1 }
 0x136   :  { %v325_v0 = vpop.f32.mrb[45].mxu0  ;;  %v3909_v23 = vpop.f32.mrb[45].mxu1 }
 0x137   :  { %v327_v41 = vpop.f32.mrb[46].mxu0  ;;  %1327 = vmatprep.mubr.bf16.mxu0 %v788_v37  ;;  %v3912_v59 = vpop.f32.mrb[46].mxu1 }
 0x138   :  { %v609_v15 = vpack.c.bf16 %v327_v41, %v323_v9  ;;  %v329_v13 = vpop.f32.mrb[47].mxu0  ;;  %1328 = vmatmul.mubr.bf16.gmra.mrb[88].mxu0 %v787_v62  ;;  %v3917_v37 = vpop.f32.mrb[47].mxu1 }
 0x139   :  { %v610_v55 = vpack.c.bf16 %v329_v13, %v325_v0  ;;  %v596_v13 = vpack.c.bf16 %v3917_v37, %v3909_v23  ;;  %v4529_v23 = vpack.c.bf16 %v3912_v59, %v3903_v10 }
 0x13a   :  { %v727_v25 = vadd.bf16 %v3629_v42, %v609_v15  ;;  %v3061_v15 = vld [vmem:[%s4496_s5 + $0x40] sm:$0xff]  }
 0x13b   :  { %v728_v34 = vadd.bf16 %v3632_v44, %v610_v55  ;;  %v4507_v55 = vpack.c.bf16 %v3672_v11, %v3661_v5  ;;  %2696 = vmatprep.subr.bf16.mxu1 %v3061_v15  ;;  %v4510_v15 = vpack.c.bf16 %v3667_v8, %v3656_v1  ;;  %v4511_v8 = vpack.c.bf16 %v3728_v63, %v3717_v57 }
 0x13c   :  { %v791_v28 = vmax.bf16 %v3237_v2, %v727_v25  ;;  %v4508_v25 = vpack.c.bf16 %v3639_v51, %v3634_v47  ;;  %2697 = vmatpush3.bf16.msra.mxu1 %v3062_v22  ;;  %v4509_v51 = vpack.c.bf16 %v3700_v12, %v3689_v27  ;;  %v654_v12 = vcombine.high %v3620_v32, %v3620_v32  ;;  %v3064_v32 = vld [vmem:[%s4496_s5 + $0x8] sm:$0xff]  }
 0x13d   :  { %v792_v49 = vmax.bf16 %v3237_v2, %v728_v34  ;;  %v3924_v0 = vpop.f32.mrb[48].mxu1  ;;  %v736_v62 = vadd.bf16 %v3632_v44, %v4507_v55  ;;  %v735_v22 = vadd.bf16 %v3629_v42, %v4510_v15 }
 0x13e   :  { %v3930_v41 = vpop.f32.mrb[49].mxu1  ;;  %v731_v34 = vadd.bf16 %v3629_v42, %v4508_v25  ;;  %v740_v25 = vadd.bf16 %v3632_v44, %v4509_v51  ;;  %v744_v51 = vadd.bf16 %v3632_v44, %v4511_v8  ;;  %v677_v15 = vpack.i.b16 %v654_v12, %v654_v12 }
 0x13f   :  { %1337 = vmatprep.mubr.bf16.mxu0 %v792_v49  ;;  %v3942_v49 = vpop.f32.mrb[50].mxu1 }
 0x140   :  { %1338 = vmatmul.mubr.bf16.gmra.mrb[92].mxu0 %v791_v28  ;;  %v3946_v11 = vpop.f32.mrb[51].mxu1  ;;  %v800_v28 = vmax.bf16 %v3237_v2, %v736_v62  ;;  %v795_v55 = vmax.bf16 %v3237_v2, %v731_v34  ;;  %v804_v27 = vmax.bf16 %v3237_v2, %v740_v25  ;;  %v3063_v25 = vld [vmem:[%s4496_s5 + $0x48] sm:$0xff]   ;;  %v808_v12 = vmax.bf16 %v3237_v2, %v744_v51 }
 0x141   :  { %1347 = vmatprep.mubr.bf16.mxu0 %v796_v54  ;;  %v600_v54 = vpack.c.bf16 %v3946_v11, %v3930_v41  ;;  %2698 = vmatprep.subr.bf16.mxu1 %v3063_v25  ;;  %v4004_v8 = vrot.slane %v677_v15, %v3624_v38  ;;  %v4513_v25 = vpack.c.bf16 %v3756_v31, %v3745_v21 }
 0x142   :  { %2699 = vmatpush3.bf16.msra.mxu1 %v3064_v32  ;;  %v4514_v51 = vpack.c.bf16 %v3723_v60, %v3712_v50  ;;  %v3065_v60 = vld [vmem:[%s4496_s5 + $0x50] sm:$0xff]   ;;  %v4531_v41 = vpack.c.bf16 %v3942_v49, %v3924_v0 }
 0x143   :  { %v686_v44 = vadd.bf16 %v4004_v8, %v4513_v25  ;;  %v4515_v25 = vpack.c.bf16 %v3784_v14, %v3773_v61  ;;  %2700 = vmatprep.subr.bf16.mxu1 %v3065_v60  ;;  %v3068_v61 = vld [vmem:[%s4496_s5 + $0x18] sm:$0xff]   ;;  %v3070_v60 = vld [vmem:[%s4496_s5 + $0x20] sm:$0xff]  }
 0x144   :  { %v743_v15 = vadd.bf16 %v3629_v42, %v4514_v51 }
 0x145   :  { %v3952_v47 = vpop.f32.mrb[52].mxu1  ;;  %v750_v31 = vmax.bf16 %v3237_v2, %v686_v44  ;;  %v3067_v44 = vld [vmem:[%s4496_s5 + $0x58] sm:$0xff]   ;;  %v690_v51 = vadd.bf16 %v4004_v8, %v4515_v25  ;;  %v4517_v25 = vpack.c.bf16 %v3812_v3, %v3801_v45  ;;  %v3072_v45 = vld [vmem:[%s4496_s5 + $0x28] sm:$0xff]  }
 0x146   :  { %v3958_v5 = vpop.f32.mrb[53].mxu1  ;;  %v807_v50 = vmax.bf16 %v3237_v2, %v743_v15 }
 0x147   :  { %v3964_v9 = vpop.f32.mrb[54].mxu1 }
 0x148   :  { %1348 = vmatmul.mubr.bf16.gmra.mrb[96].mxu0 %v795_v55  ;;  %v3968_v34 = vpop.f32.mrb[55].mxu1  ;;  %v799_v55 = vmax.bf16 %v3237_v2, %v735_v22  ;;  %v4512_v22 = vpack.c.bf16 %v3695_v30, %v3684_v24  ;;  %v653_v30 = vcombine.high %v3617_v36, %v3617_v36 }
 0x149   :  { %1357 = vmatprep.mubr.bf16.mxu0 %v800_v28 }
 0x14d   :  { %v3976_v1 = vpop.f32.mrb[56].mxu1 }
 0x14e   :  { %v3982_v62 = vpop.f32.mrb[57].mxu1 }
 0x150   :  { %1358 = vmatmul.mubr.bf16.gmra.mrb[100].mxu0 %v799_v55  ;;  %v3994_v55 = vpop.f32.mrb[58].mxu1 }
 0x151   :  { %1367 = vmatprep.mubr.bf16.mxu0 %v804_v27  ;;  %v739_v27 = vadd.bf16 %v3629_v42, %v4512_v22  ;;  %v3998_v57 = vpop.f32.mrb[59].mxu1 }
 0x153   :  { %v803_v24 = vmax.bf16 %v3237_v2, %v739_v27  ;;  %v670_v27 = vpack.i.b16 %v653_v30, %v653_v30  ;;  %v3066_v30 = vld [vmem:[%s4496_s5 + $0x10] sm:$0xff]  }
 0x154   :  { %2701 = vmatpush3.bf16.msra.mxu1 %v3066_v30 }
 0x155   :  { %v4009_v22 = vpop.f32.mrb[60].mxu1  ;;  %2702 = vmatprep.subr.bf16.mxu1 %v3067_v44  ;;  %v3071_v44 = vld [vmem:[%s4496_s5 + $0x68] sm:$0xff]  }
 0x156   :  { %v4015_v32 = vpop.f32.mrb[61].mxu1 }
 0x157   :  { %v4021_v63 = vpop.f32.mrb[62].mxu1 }
 0x158   :  { %1368 = vmatmul.mubr.bf16.gmra.mrb[104].mxu0 %v803_v24  ;;  %v4025_v24 = vpop.f32.mrb[63].mxu1  ;;  %2703 = vmatpush3.bf16.msra.mxu1 %v3068_v61 }
 0x159   :  { %1377 = vmatprep.mubr.bf16.mxu0 %v808_v12  ;;  %v4031_v12 = vrot.slane %v670_v27, %v3624_v38  ;;  %v4516_v27 = vpack.c.bf16 %v3751_v26, %v3740_v18  ;;  %v3069_v18 = vld [vmem:[%s4496_s5 + $0x60] sm:$0xff]   ;;  %v754_v26 = vmax.bf16 %v3237_v2, %v690_v51  ;;  %v694_v51 = vadd.bf16 %v4004_v8, %v4517_v25 }
 0x15a   :  { %2704 = vmatprep.subr.bf16.mxu1 %v3069_v18 }
 0x15b   :  { %v713_v37 = vadd.bf16 %v4031_v12, %v4529_v23  ;;  %v717_v11 = vadd.bf16 %v4031_v12, %v4531_v41  ;;  %v3078_v41 = vld [vmem:[%s4498_s7 + $0x8] sm:$0xff]  }
 0x15c   :  { %2705 = vmatpush3.bf16.msra.mxu1 %v3070_v60  ;;  %v3074_v60 = vld [vmem:[%s4496_s5 + $0x30] sm:$0xff]  }
 0x15d   :  { %v4034_v42 = vpop.f32.mrb[64].mxu1  ;;  %2706 = vmatprep.subr.bf16.mxu1 %v3071_v44  ;;  %v3075_v44 = vld [vmem:[%s4496_s5 + $0x78] sm:$0xff]   ;;  %v781_v10 = vmax.bf16 %v3237_v2, %v717_v11 }
 0x15e   :  { %v4049_v15 = vpop.f32.mrb[65].mxu1 }
 0x15f   :  { %v4055_v36 = vpop.f32.mrb[66].mxu1 }
 0x160   :  { %1378 = vmatmul.mubr.bf16.gmra.mrb[108].mxu0 %v807_v50  ;;  %v685_v50 = vadd.bf16 %v4031_v12, %v4516_v27  ;;  %v4059_v28 = vpop.f32.mrb[67].mxu1  ;;  %2707 = vmatpush3.bf16.msra.mxu1 %v3072_v45  ;;  %v4520_v45 = vpack.c.bf16 %v3807_v52, %v3796_v40 }
 0x161   :  { %1420 = vmatprep.mubr.bf16.mxu0 %v750_v31  ;;  %v616_v14 = vpack.c.bf16 %v4059_v28, %v4049_v15  ;;  %v4538_v28 = vpack.c.bf16 %v4055_v36, %v4034_v42 }
 0x162   :  { %v749_v31 = vmax.bf16 %v3237_v2, %v685_v50  ;;  %v4518_v50 = vpack.c.bf16 %v3779_v6, %v3768_v56  ;;  %v3073_v56 = vld [vmem:[%s4496_s5 + $0x70] sm:$0xff]   ;;  %v758_v6 = vmax.bf16 %v3237_v2, %v694_v51 }
 0x163   :  { %2708 = vmatprep.subr.bf16.mxu1 %v3073_v56  ;;  %v4522_v56 = vpack.c.bf16 %v3835_v7, %v3824_v39  ;;  %v4523_v39 = vpack.c.bf16 %v3881_v46, %v3873_v35  ;;  %v4526_v35 = vpack.c.bf16 %v3876_v20, %v3871_v43  ;;  %v733_v15 = vadd.bf16 %v4031_v12, %v4538_v28 }
 0x164   :  { %v689_v61 = vadd.bf16 %v4031_v12, %v4518_v50  ;;  %v4519_v50 = vpack.c.bf16 %v3840_v19, %v3829_v58  ;;  %2709 = vmatpush3.bf16.msra.mxu1 %v3074_v60  ;;  %v3076_v58 = vld [vmem:[%s4496_s5 + $0x38] sm:$0xff]   ;;  %v4521_v60 = vpack.c.bf16 %v3865_v17, %v3857_v29 }
 0x165   :  { %v4074_v30 = vpop.f32.mrb[68].mxu1  ;;  %2710 = vmatprep.subr.bf16.mxu1 %v3075_v44  ;;  %v697_v44 = vadd.bf16 %v4031_v12, %v4522_v56  ;;  %v706_v7 = vadd.bf16 %v4004_v8, %v4523_v39  ;;  %v4524_v56 = vpack.c.bf16 %v3860_v48, %v3852_v4  ;;  %v705_v46 = vadd.bf16 %v4031_v12, %v4526_v35 }
 0x166   :  { %v4083_v27 = vpop.f32.mrb[69].mxu1  ;;  %v698_v51 = vadd.bf16 %v4004_v8, %v4519_v50  ;;  %v702_v50 = vadd.bf16 %v4004_v8, %v4521_v60  ;;  %v4530_v39 = vpack.c.bf16 %v3968_v34, %v3958_v5  ;;  %v4533_v5 = vpack.c.bf16 %v3964_v9, %v3952_v47 }
 0x167   :  { %v761_v17 = vmax.bf16 %v3237_v2, %v697_v44  ;;  %v770_v60 = vmax.bf16 %v3237_v2, %v706_v7  ;;  %v769_v48 = vmax.bf16 %v3237_v2, %v705_v46 }
 0x168   :  { %1421 = vmatmul.mubr.bf16.vlgmr.msra.gmra.mrb[48].mxu0 %v749_v31  ;;  %v4089_v31 = vpop.f32.mrb[70].mxu1  ;;  %v762_v40 = vmax.bf16 %v3237_v2, %v698_v51  ;;  %2711 = vmatpush3.bf16.msra.mxu1 %v3076_v58  ;;  %v766_v29 = vmax.bf16 %v3237_v2, %v702_v50  ;;  %v4525_v50 = vpack.c.bf16 %v3897_v33, %v3889_v16  ;;  %v4527_v16 = vld [vmem:[#allocation6_spill] sm:$0xff] }
 0x169   :  { %1430 = vmatprep.mubr.bf16.mxu0 %v754_v26  ;;  %v4093_v21 = vpop.f32.mrb[71].mxu1  ;;  %v753_v26 = vmax.bf16 %v3237_v2, %v689_v61  ;;  %v4528_v33 = vpack.c.bf16 %v3892_v53, %v4527_v16  ;;  %v722_v7 = vadd.bf16 %v4004_v8, %v4530_v39  ;;  %v721_v34 = vadd.bf16 %v4031_v12, %v4533_v5  ;;  %v3079_v5 = vld [vmem:[%s4498_s7 + $0x10] sm:$0xff]  }
 0x16a   :  { %v710_v44 = vadd.bf16 %v4004_v8, %v4525_v50  ;;  %v734_v50 = vadd.bf16 %v4004_v8, %v616_v14 }
 0x16b   :  { %v786_v59 = vmax.bf16 %v3237_v2, %v722_v7  ;;  %v785_v49 = vmax.bf16 %v3237_v2, %v721_v34 }
 0x16c   :  { %v774_v4 = vmax.bf16 %v3237_v2, %v710_v44  ;;  %v4537_v44 = vpack.c.bf16 %v4093_v21, %v4083_v27  ;;  %v4539_v21 = vpack.c.bf16 %v4089_v31, %v4074_v30 }
 0x16d   :  { %v4108_v25 = vpop.f32.mrb[72].mxu1 }
 0x16e   :  { %v4117_v61 = vpop.f32.mrb[73].mxu1  ;;  %v738_v35 = vadd.bf16 %v4004_v8, %v4537_v44  ;;  %v737_v27 = vadd.bf16 %v4031_v12, %v4539_v21 }
 0x16f   :  { %v4123_v18 = vpop.f32.mrb[74].mxu1 }
 0x170   :  { %1431 = vmatmul.mubr.bf16.gmra.mrb[52].mxu0 %v753_v26  ;;  %v693_v26 = vadd.bf16 %v4031_v12, %v4520_v45  ;;  %v4127_v3 = vpop.f32.mrb[75].mxu1  ;;  %v801_v42 = vmax.bf16 %v3237_v2, %v737_v27 }
 0x171   :  { %1440 = vmatprep.mubr.bf16.mxu0 %v758_v6  ;;  %v624_v19 = vpack.c.bf16 %v4127_v3, %v4117_v61  ;;  %v4540_v3 = vpack.c.bf16 %v4123_v18, %v4108_v25  ;;  %v4542_v25 = vld [vmem:[#allocation5_spill] sm:$0xff] }
 0x172   :  { %v757_v52 = vmax.bf16 %v3237_v2, %v693_v26 }
 0x173   :  { %v742_v14 = vadd.bf16 %v4004_v8, %v624_v19  ;;  %v741_v61 = vadd.bf16 %v4031_v12, %v4540_v3 }
 0x175   :  { %v4136_v6 = vpop.f32.mrb[76].mxu1  ;;  %v806_v36 = vmax.bf16 %v3237_v2, %v742_v14  ;;  %v805_v31 = vmax.bf16 %v3237_v2, %v741_v61 }
 0x176   :  { %v4142_v45 = vpop.f32.mrb[77].mxu1 }
 0x177   :  { %v4148_v51 = vpop.f32.mrb[78].mxu1 }
 0x178   :  { %1441 = vmatmul.mubr.bf16.gmra.mrb[56].mxu0 %v757_v52  ;;  %v4152_v58 = vpop.f32.mrb[79].mxu1  ;;  %v701_v52 = vadd.bf16 %v4031_v12, %v4524_v56  ;;  %v4541_v19 = vpack.c.bf16 %v4148_v51, %v4136_v6 }
 0x179   :  { %1450 = vmatprep.mubr.bf16.mxu0 %v762_v40  ;;  %v628_v40 = vpack.c.bf16 %v4152_v58, %v4142_v45 }
 0x17a   :  { %v765_v26 = vmax.bf16 %v3237_v2, %v701_v52  ;;  %v4534_v52 = vpack.c.bf16 %v4025_v24, %v4015_v32  ;;  %v4536_v32 = vpack.c.bf16 %v4021_v63, %v4009_v22  ;;  %v802_v63 = vmax.bf16 %v3237_v2, %v738_v35 }
 0x17b   :  { %v797_v22 = vmax.bf16 %v3237_v2, %v733_v15  ;;  %v746_v46 = vadd.bf16 %v4004_v8, %v628_v40 }
 0x17c   :  { %v729_v24 = vadd.bf16 %v4031_v12, %v4536_v32 }
 0x17d   :  { %v810_v30 = vmax.bf16 %v3237_v2, %v746_v46 }
 0x180   :  { %1451 = vmatmul.mubr.bf16.gmra.mrb[60].mxu0 %v761_v17  ;;  %v718_v17 = vadd.bf16 %v4004_v8, %v600_v54  ;;  %v4532_v54 = vpack.c.bf16 %v3998_v57, %v3982_v62  ;;  %v4535_v62 = vpack.c.bf16 %v3994_v55, %v3976_v1  ;;  %v798_v1 = vmax.bf16 %v3237_v2, %v734_v50 }
 0x181   :  { %1460 = vmatprep.mubr.bf16.mxu0 %v766_v29  ;;  %v709_v29 = vadd.bf16 %v4031_v12, %v4528_v33  ;;  %v793_v55 = vmax.bf16 %v3237_v2, %v729_v24 }
 0x182   :  { %v782_v53 = vmax.bf16 %v3237_v2, %v718_v17  ;;  %v726_v56 = vadd.bf16 %v4004_v8, %v4532_v54  ;;  %v725_v57 = vadd.bf16 %v4031_v12, %v4535_v62  ;;  %v3080_v62 = vld [vmem:[%s4498_s7 + $0x18] sm:$0xff]  }
 0x183   :  { %v773_v43 = vmax.bf16 %v3237_v2, %v709_v29 }
 0x184   :  { %v790_v0 = vmax.bf16 %v3237_v2, %v726_v56  ;;  %v789_v47 = vmax.bf16 %v3237_v2, %v725_v57 }
 0x188   :  { %1461 = vmatmul.mubr.bf16.gmra.mrb[64].mxu0 %v765_v26  ;;  %v714_v26 = vadd.bf16 %v4004_v8, %v596_v13  ;;  %v777_v13 = vmax.bf16 %v3237_v2, %v713_v37 }
 0x189   :  { %1470 = vmatprep.mubr.bf16.mxu0 %v770_v60  ;;  %v730_v60 = vadd.bf16 %v4004_v8, %v4534_v52  ;;  %v2638_v8 = vld.sshfl [vmem:[%s4495_s4] sm:$0x11 pattern:$0x75316420] }
 0x18a   :  { %v778_v20 = vmax.bf16 %v3237_v2, %v714_v26  ;;  %v1622_v18 = vcombine.high %v2638_v8, %v2638_v8  ;;  %v1629_v58 = vrot.slane %v2638_v8, %v4542_v25 }
 0x18b   :  { %v794_v9 = vmax.bf16 %v3237_v2, %v730_v60 }
 0x18c   :  { %v1636_v40 = vrot.slane %v1622_v18, %v4542_v25 }
 0x18e   :  { %v1645_v26 = vpack.i.b16 %v1636_v40, %v1636_v40 }
 0x190   :  { %1471 = vmatmul.mubr.bf16.gmra.mrb[68].mxu0 %v769_v48  ;;  %v1638_v48 = vpack.i.b16 %v1629_v58, %v1629_v58  ;;  %v4282_v51 = vrot.slane %v1645_v26, %v3624_v38 }
 0x191   :  { %1480 = vmatprep.mubr.bf16.mxu0 %v774_v4  ;;  %v745_v4 = vadd.bf16 %v4031_v12, %v4541_v19 }
 0x192   :  { %v4279_v6 = vrot.slane %v1638_v48, %v3624_v38 }
 0x193   :  { %v809_v45 = vmax.bf16 %v3237_v2, %v745_v4 }
 0x198   :  { %1481 = vmatmul.mubr.bf16.gmra.mrb[72].mxu0 %v773_v43  ;;  %v3077_v43 = vld [vmem:[%s4498_s7] sm:$0xff]  }
 0x199   :  { %1490 = vmatprep.mubr.bf16.mxu0 %v778_v20  ;;  %2832 = vmatprep.subr.bf16.mxu1 %v3077_v43 }
 0x1a0   :  { %1491 = vmatmul.mubr.bf16.gmra.mrb[76].mxu0 %v777_v13 }
 0x1a1   :  { %1500 = vmatprep.mubr.bf16.mxu0 %v782_v53 }
 0x1a8   :  { %1501 = vmatmul.mubr.bf16.gmra.mrb[80].mxu0 %v781_v10 }
 0x1a9   :  { %1510 = vmatprep.mubr.bf16.mxu0 %v786_v59 }
 0x1b0   :  { %1511 = vmatmul.mubr.bf16.gmra.mrb[84].mxu0 %v785_v49 }
 0x1b1   :  { %1520 = vmatprep.mubr.bf16.mxu0 %v790_v0 }
 0x1b8   :  { %1521 = vmatmul.mubr.bf16.gmra.mrb[88].mxu0 %v789_v47 }
 0x1b9   :  { %1530 = vmatprep.mubr.bf16.mxu0 %v794_v9 }
 0x1c0   :  { %1531 = vmatmul.mubr.bf16.gmra.mrb[92].mxu0 %v793_v55 }
 0x1c1   :  { %1540 = vmatprep.mubr.bf16.mxu0 %v798_v1 }
 0x1c8   :  { %1541 = vmatmul.mubr.bf16.gmra.mrb[96].mxu0 %v797_v22 }
 0x1c9   :  { %1550 = vmatprep.mubr.bf16.mxu0 %v802_v63 }
 0x1d0   :  { %1551 = vmatmul.mubr.bf16.gmra.mrb[100].mxu0 %v801_v42 }
 0x1d1   :  { %1560 = vmatprep.mubr.bf16.mxu0 %v806_v36 }
 0x1d8   :  { %1561 = vmatmul.mubr.bf16.gmra.mrb[104].mxu0 %v805_v31 }
 0x1d9   :  { %1570 = vmatprep.mubr.bf16.mxu0 %v810_v30 }
 0x1e0   :  { %1571 = vmatmul.mubr.bf16.gmra.mrb[108].mxu0 %v809_v45 }
 0x23b   :  { %v1422_v16 = vpop.f32.mrb[48].mxu0 }
 0x23c   :  { %v1424_v33 = vpop.f32.mrb[49].mxu0 }
 0x23d   :  { %v1426_v12 = vpop.f32.mrb[50].mxu0 }
 0x23e   :  { %v1581_v29 = vpack.c.bf16 %v1426_v12, %v1422_v16  ;;  %v1428_v20 = vpop.f32.mrb[51].mxu0 }
 0x23f   :  { %v1582_v17 = vpack.c.bf16 %v1428_v20, %v1424_v33 }
 0x240   :  { %v1651_v23 = vadd.bf16 %v4279_v6, %v1581_v29 }
 0x241   :  { %v1652_v37 = vadd.bf16 %v4282_v51, %v1582_v17 }
 0x242   :  { %v1683_v39 = vmax.bf16 %v3237_v2, %v1651_v23 }
 0x243   :  { %v1432_v53 = vpop.f32.mrb[52].mxu0  ;;  %v1684_v13 = vmax.bf16 %v3237_v2, %v1652_v37 }
 0x244   :  { %v1434_v7 = vpop.f32.mrb[53].mxu0 }
 0x245   :  { %v1436_v11 = vpop.f32.mrb[54].mxu0  ;;  %1875 = vmatprep.mubr.bf16.mxu1 %v1684_v13 }
 0x246   :  { %v1583_v59 = vpack.c.bf16 %v1436_v11, %v1432_v53  ;;  %v1438_v10 = vpop.f32.mrb[55].mxu0  ;;  %1876 = vmatmul.mubr.bf16.vlgmr.msra.gmra.mrb[80].mxu1 %v1683_v39 }
 0x247   :  { %v1584_v54 = vpack.c.bf16 %v1438_v10, %v1434_v7  ;;  %2833 = vmatpush3.bf16.msra.mxu1 %v3077_v43 }
 0x248   :  { %v1653_v56 = vadd.bf16 %v4279_v6, %v1583_v59  ;;  %2834 = vmatprep.subr.bf16.mxu1 %v3078_v41 }
 0x249   :  { %v1654_v34 = vadd.bf16 %v4282_v51, %v1584_v54 }
 0x24a   :  { %v1685_v60 = vmax.bf16 %v3237_v2, %v1653_v56 }
 0x24b   :  { %v1442_v0 = vpop.f32.mrb[56].mxu0  ;;  %v1686_v49 = vmax.bf16 %v3237_v2, %v1654_v34  ;;  %2835 = vmatpush3.bf16.msra.mxu1 %v3078_v41 }
 0x24c   :  { %v1444_v52 = vpop.f32.mrb[57].mxu0  ;;  %2836 = vmatprep.subr.bf16.mxu1 %v3079_v5 }
 0x24d   :  { %v1446_v57 = vpop.f32.mrb[58].mxu0  ;;  %1883 = vmatprep.mubr.bf16.mxu1 %v1686_v49 }
 0x24e   :  { %v1585_v9 = vpack.c.bf16 %v1446_v57, %v1442_v0  ;;  %v1448_v47 = vpop.f32.mrb[59].mxu0  ;;  %1884 = vmatmul.mubr.bf16.gmra.mrb[84].mxu1 %v1685_v60 }
 0x24f   :  { %v1586_v50 = vpack.c.bf16 %v1448_v47, %v1444_v52  ;;  %2837 = vmatpush3.bf16.msra.mxu1 %v3079_v5 }
 0x250   :  { %v1655_v32 = vadd.bf16 %v4279_v6, %v1585_v9  ;;  %2838 = vmatprep.subr.bf16.mxu1 %v3080_v62 }
 0x251   :  { %v1656_v24 = vadd.bf16 %v4282_v51, %v1586_v50 }
 0x252   :  { %v1687_v35 = vmax.bf16 %v3237_v2, %v1655_v32 }
 0x253   :  { %v1452_v1 = vpop.f32.mrb[60].mxu0  ;;  %v1688_v55 = vmax.bf16 %v3237_v2, %v1656_v24  ;;  %2839 = vmatpush3.bf16.msra.mxu1 %v3080_v62 }
 0x254   :  { %v1454_v44 = vpop.f32.mrb[61].mxu0 }
 0x255   :  { %v1456_v28 = vpop.f32.mrb[62].mxu0  ;;  %1891 = vmatprep.mubr.bf16.mxu1 %v1688_v55 }
 0x256   :  { %v1587_v15 = vpack.c.bf16 %v1456_v28, %v1452_v1  ;;  %v1458_v63 = vpop.f32.mrb[63].mxu0  ;;  %1892 = vmatmul.mubr.bf16.gmra.mrb[88].mxu1 %v1687_v35 }
 0x257   :  { %v1588_v22 = vpack.c.bf16 %v1458_v63, %v1454_v44 }
 0x258   :  { %v1657_v14 = vadd.bf16 %v4279_v6, %v1587_v15 }
 0x259   :  { %v1658_v21 = vadd.bf16 %v4282_v51, %v1588_v22 }
 0x25a   :  { %v1689_v46 = vmax.bf16 %v3237_v2, %v1657_v14 }
 0x25b   :  { %v1462_v27 = vpop.f32.mrb[64].mxu0  ;;  %v1690_v36 = vmax.bf16 %v3237_v2, %v1658_v21 }
 0x25c   :  { %v1464_v42 = vpop.f32.mrb[65].mxu0 }
 0x25d   :  { %v1466_v3 = vpop.f32.mrb[66].mxu0  ;;  %1899 = vmatprep.mubr.bf16.mxu1 %v1690_v36 }
 0x25e   :  { %v1589_v61 = vpack.c.bf16 %v1466_v3, %v1462_v27  ;;  %v1468_v30 = vpop.f32.mrb[67].mxu0  ;;  %1900 = vmatmul.mubr.bf16.gmra.mrb[92].mxu1 %v1689_v46 }
 0x25f   :  { %v1590_v31 = vpack.c.bf16 %v1468_v30, %v1464_v42 }
 0x260   :  { %v1659_v19 = vadd.bf16 %v4279_v6, %v1589_v61 }
 0x261   :  { %v1660_v4 = vadd.bf16 %v4282_v51, %v1590_v31 }
 0x262   :  { %v1691_v25 = vmax.bf16 %v3237_v2, %v1659_v19 }
 0x263   :  { %v1472_v45 = vpop.f32.mrb[68].mxu0  ;;  %v1692_v8 = vmax.bf16 %v3237_v2, %v1660_v4 }
 0x264   :  { %v1474_v18 = vpop.f32.mrb[69].mxu0 }
 0x265   :  { %v1476_v58 = vpop.f32.mrb[70].mxu0  ;;  %1907 = vmatprep.mubr.bf16.mxu1 %v1692_v8 }
 0x266   :  { %v1591_v40 = vpack.c.bf16 %v1476_v58, %v1472_v45  ;;  %v1478_v48 = vpop.f32.mrb[71].mxu0  ;;  %1908 = vmatmul.mubr.bf16.gmra.mrb[96].mxu1 %v1691_v25 }
 0x267   :  { %v1592_v26 = vpack.c.bf16 %v1478_v48, %v1474_v18 }
 0x268   :  { %v1661_v16 = vadd.bf16 %v4279_v6, %v1591_v40 }
 0x269   :  { %v1662_v33 = vadd.bf16 %v4282_v51, %v1592_v26 }
 0x26a   :  { %v1693_v43 = vmax.bf16 %v3237_v2, %v1661_v16 }
 0x26b   :  { %v1482_v12 = vpop.f32.mrb[72].mxu0  ;;  %v1694_v29 = vmax.bf16 %v3237_v2, %v1662_v33 }
 0x26c   :  { %v1484_v20 = vpop.f32.mrb[73].mxu0 }
 0x26d   :  { %v1486_v17 = vpop.f32.mrb[74].mxu0  ;;  %1915 = vmatprep.mubr.bf16.mxu1 %v1694_v29 }
 0x26e   :  { %v1593_v23 = vpack.c.bf16 %v1486_v17, %v1482_v12  ;;  %v1488_v37 = vpop.f32.mrb[75].mxu0  ;;  %1916 = vmatmul.mubr.bf16.gmra.mrb[100].mxu1 %v1693_v43 }
 0x26f   :  { %v1594_v53 = vpack.c.bf16 %v1488_v37, %v1484_v20  ;;  %v3081_v20 = vld [vmem:[%s4498_s7 + $0x20] sm:$0xff]  }
 0x270   :  { %v1663_v13 = vadd.bf16 %v4279_v6, %v1593_v23  ;;  %2840 = vmatprep.subr.bf16.mxu1 %v3081_v20 }
 0x271   :  { %v1664_v39 = vadd.bf16 %v4282_v51, %v1594_v53  ;;  %2841 = vmatpush3.bf16.msra.mxu1 %v3081_v20 }
 0x272   :  { %v1695_v59 = vmax.bf16 %v3237_v2, %v1663_v13 }
 0x273   :  { %v1492_v7 = vpop.f32.mrb[76].mxu0  ;;  %v1696_v41 = vmax.bf16 %v3237_v2, %v1664_v39  ;;  %v3082_v39 = vld [vmem:[%s4498_s7 + $0x28] sm:$0xff]  }
 0x274   :  { %v1494_v11 = vpop.f32.mrb[77].mxu0  ;;  %2842 = vmatprep.subr.bf16.mxu1 %v3082_v39 }
 0x275   :  { %v1496_v10 = vpop.f32.mrb[78].mxu0  ;;  %1923 = vmatprep.mubr.bf16.mxu1 %v1696_v41  ;;  %2843 = vmatpush3.bf16.msra.mxu1 %v3082_v39 }
 0x276   :  { %v1595_v54 = vpack.c.bf16 %v1496_v10, %v1492_v7  ;;  %v1498_v56 = vpop.f32.mrb[79].mxu0  ;;  %1924 = vmatmul.mubr.bf16.gmra.mrb[104].mxu1 %v1695_v59  ;;  %v3083_v10 = vld [vmem:[%s4498_s7 + $0x30] sm:$0xff]  }
 0x277   :  { %v1596_v5 = vpack.c.bf16 %v1498_v56, %v1494_v11  ;;  %2844 = vmatprep.subr.bf16.mxu1 %v3083_v10 }
 0x278   :  { %v1665_v34 = vadd.bf16 %v4279_v6, %v1595_v54 }
 0x279   :  { %v1666_v0 = vadd.bf16 %v4282_v51, %v1596_v5  ;;  %2845 = vmatpush3.bf16.msra.mxu1 %v3083_v10 }
 0x27a   :  { %v1697_v62 = vmax.bf16 %v3237_v2, %v1665_v34 }
 0x27b   :  { %v1502_v49 = vpop.f32.mrb[80].mxu0  ;;  %v1698_v52 = vmax.bf16 %v3237_v2, %v1666_v0 }
 0x27c   :  { %v1504_v60 = vpop.f32.mrb[81].mxu0 }
 0x27d   :  { %v1506_v57 = vpop.f32.mrb[82].mxu0  ;;  %1931 = vmatprep.mubr.bf16.mxu1 %v1698_v52  ;;  %v3084_v52 = vld [vmem:[%s4498_s7 + $0x38] sm:$0xff]  }
 0x27e   :  { %v1597_v9 = vpack.c.bf16 %v1506_v57, %v1502_v49  ;;  %v1508_v47 = vpop.f32.mrb[83].mxu0  ;;  %1932 = vmatmul.mubr.bf16.gmra.mrb[108].mxu1 %v1697_v62  ;;  %2846 = vmatprep.subr.bf16.mxu1 %v3084_v52 }
 0x27f   :  { %v1598_v50 = vpack.c.bf16 %v1508_v47, %v1504_v60  ;;  %2847 = vmatpush3.bf16.msra.mxu1 %v3084_v52 }
 0x280   :  { %v1667_v32 = vadd.bf16 %v4279_v6, %v1597_v9 }
 0x281   :  { %v1668_v24 = vadd.bf16 %v4282_v51, %v1598_v50 }
 0x282   :  { %v1699_v35 = vmax.bf16 %v3237_v2, %v1667_v32 }
 0x283   :  { %v1512_v1 = vpop.f32.mrb[84].mxu0  ;;  %v1700_v55 = vmax.bf16 %v3237_v2, %v1668_v24 }
 0x284   :  { %v1514_v44 = vpop.f32.mrb[85].mxu0 }
 0x285   :  { %v1516_v28 = vpop.f32.mrb[86].mxu0  ;;  %1939 = vmatprep.mubr.bf16.mxu1 %v1700_v55 }
 0x286   :  { %v1599_v15 = vpack.c.bf16 %v1516_v28, %v1512_v1  ;;  %v1518_v63 = vpop.f32.mrb[87].mxu0  ;;  %1940 = vmatmul.mubr.bf16.gmra.mrb[112].mxu1 %v1699_v35 }
 0x287   :  { %v1600_v22 = vpack.c.bf16 %v1518_v63, %v1514_v44 }
 0x288   :  { %v1669_v14 = vadd.bf16 %v4279_v6, %v1599_v15 }
 0x289   :  { %v1670_v21 = vadd.bf16 %v4282_v51, %v1600_v22 }
 0x28a   :  { %v1701_v46 = vmax.bf16 %v3237_v2, %v1669_v14 }
 0x28b   :  { %v1522_v27 = vpop.f32.mrb[88].mxu0  ;;  %v1702_v36 = vmax.bf16 %v3237_v2, %v1670_v21 }
 0x28c   :  { %v1524_v42 = vpop.f32.mrb[89].mxu0 }
 0x28d   :  { %v1526_v3 = vpop.f32.mrb[90].mxu0  ;;  %1947 = vmatprep.mubr.bf16.mxu1 %v1702_v36 }
 0x28e   :  { %v1601_v61 = vpack.c.bf16 %v1526_v3, %v1522_v27  ;;  %v1528_v30 = vpop.f32.mrb[91].mxu0  ;;  %1948 = vmatmul.mubr.bf16.gmra.mrb[116].mxu1 %v1701_v46 }
 0x28f   :  { %v1602_v31 = vpack.c.bf16 %v1528_v30, %v1524_v42  ;;  %v2020_v30 = vld [vmem:[%s4497_s6] sm:$0x1] }
 0x290   :  { %v1671_v19 = vadd.bf16 %v4279_v6, %v1601_v61 }
 0x291   :  { %v1672_v4 = vadd.bf16 %v4282_v51, %v1602_v31 }
 0x292   :  { %v1703_v25 = vmax.bf16 %v3237_v2, %v1671_v19  ;;  %v2022_v19 = vpack.i.b16 %v2020_v30, %v2020_v30 }
 0x293   :  { %v1532_v45 = vpop.f32.mrb[92].mxu0  ;;  %v1704_v8 = vmax.bf16 %v3237_v2, %v1672_v4 }
 0x294   :  { %v1534_v18 = vpop.f32.mrb[93].mxu0 }
 0x295   :  { %v1536_v58 = vpop.f32.mrb[94].mxu0  ;;  %1955 = vmatprep.mubr.bf16.mxu1 %v1704_v8 }
 0x296   :  { %v1603_v40 = vpack.c.bf16 %v1536_v58, %v1532_v45  ;;  %v1538_v48 = vpop.f32.mrb[95].mxu0  ;;  %1956 = vmatmul.mubr.bf16.gmra.mrb[120].mxu1 %v1703_v25 }
 0x297   :  { %v1604_v26 = vpack.c.bf16 %v1538_v48, %v1534_v18 }
 0x298   :  { %v1673_v16 = vadd.bf16 %v4279_v6, %v1603_v40 }
 0x299   :  { %v1674_v33 = vadd.bf16 %v4282_v51, %v1604_v26 }
 0x29a   :  { %v1705_v17 = vmax.bf16 %v3237_v2, %v1673_v16 }
 0x29b   :  { %v1542_v12 = vpop.f32.mrb[96].mxu0  ;;  %v1706_v29 = vmax.bf16 %v3237_v2, %v1674_v33 }
 0x29c   :  { %v1544_v43 = vpop.f32.mrb[97].mxu0 }
 0x29d   :  { %v1546_v23 = vpop.f32.mrb[98].mxu0  ;;  %1963 = vmatprep.mubr.bf16.mxu1 %v1706_v29 }
 0x29e   :  { %v1605_v37 = vpack.c.bf16 %v1546_v23, %v1542_v12  ;;  %v1548_v53 = vpop.f32.mrb[99].mxu0  ;;  %1964 = vmatmul.mubr.bf16.gmra.mrb[124].mxu1 %v1705_v17 }
 0x29f   :  { %v1606_v13 = vpack.c.bf16 %v1548_v53, %v1544_v43 }
 0x2a0   :  { %v1675_v7 = vadd.bf16 %v4279_v6, %v1605_v37 }
 0x2a1   :  { %v1676_v41 = vadd.bf16 %v4282_v51, %v1606_v13 }
 0x2a2   :  { %v1707_v56 = vmax.bf16 %v3237_v2, %v1675_v7 }
 0x2a3   :  { %v1552_v11 = vpop.f32.mrb[100].mxu0  ;;  %v1708_v59 = vmax.bf16 %v3237_v2, %v1676_v41 }
 0x2a4   :  { %v1554_v54 = vpop.f32.mrb[101].mxu0 }
 0x2a5   :  { %v1556_v5 = vpop.f32.mrb[102].mxu0  ;;  %1971 = vmatprep.mubr.bf16.mxu1 %v1708_v59 }
 0x2a6   :  { %v1607_v34 = vpack.c.bf16 %v1556_v5, %v1552_v11  ;;  %v1558_v0 = vpop.f32.mrb[103].mxu0  ;;  %1972 = vmatmul.mubr.bf16.gmra.mrb[128].mxu1 %v1707_v56 }
 0x2a7   :  { %v1608_v49 = vpack.c.bf16 %v1558_v0, %v1554_v54 }
 0x2a8   :  { %v1677_v60 = vadd.bf16 %v4279_v6, %v1607_v34 }
 0x2a9   :  { %v1678_v62 = vadd.bf16 %v4282_v51, %v1608_v49 }
 0x2aa   :  { %v1709_v50 = vmax.bf16 %v3237_v2, %v1677_v60 }
 0x2ab   :  { %v1562_v57 = vpop.f32.mrb[104].mxu0  ;;  %v1710_v9 = vmax.bf16 %v3237_v2, %v1678_v62 }
 0x2ac   :  { %v1564_v47 = vpop.f32.mrb[105].mxu0 }
 0x2ad   :  { %v1566_v32 = vpop.f32.mrb[106].mxu0  ;;  %1979 = vmatprep.mubr.bf16.mxu1 %v1710_v9 }
 0x2ae   :  { %v1609_v24 = vpack.c.bf16 %v1566_v32, %v1562_v57  ;;  %v1568_v1 = vpop.f32.mrb[107].mxu0  ;;  %1980 = vmatmul.mubr.bf16.gmra.mrb[132].mxu1 %v1709_v50 }
 0x2af   :  { %v1610_v55 = vpack.c.bf16 %v1568_v1, %v1564_v47 }
 0x2b0   :  { %v1679_v44 = vadd.bf16 %v4279_v6, %v1609_v24 }
 0x2b1   :  { %v1680_v35 = vadd.bf16 %v4282_v51, %v1610_v55 }
 0x2b2   :  { %v1711_v22 = vmax.bf16 %v3237_v2, %v1679_v44 }
 0x2b3   :  { %v1572_v28 = vpop.f32.mrb[108].mxu0  ;;  %v1712_v15 = vmax.bf16 %v3237_v2, %v1680_v35 }
 0x2b4   :  { %v1574_v63 = vpop.f32.mrb[109].mxu0 }
 0x2b5   :  { %v1576_v14 = vpop.f32.mrb[110].mxu0  ;;  %1987 = vmatprep.mubr.bf16.mxu1 %v1712_v15 }
 0x2b6   :  { %v1611_v21 = vpack.c.bf16 %v1576_v14, %v1572_v28  ;;  %v1578_v27 = vpop.f32.mrb[111].mxu0  ;;  %1988 = vmatmul.mubr.bf16.gmra.mrb[136].mxu1 %v1711_v22 }
 0x2b7   :  { %v1612_v36 = vpack.c.bf16 %v1578_v27, %v1574_v63 }
 0x2b8   :  { %v1681_v42 = vadd.bf16 %v4279_v6, %v1611_v21  ;;  %v4376_v6 = vrot.slane %v2022_v19, %v3624_v38 }
 0x2b9   :  { %v1682_v46 = vadd.bf16 %v4282_v51, %v1612_v36 }
 0x2ba   :  { %v1713_v61 = vmax.bf16 %v3237_v2, %v1681_v42 }
 0x2bb   :  { %v1714_v3 = vmax.bf16 %v3237_v2, %v1682_v46 }
 0x2bd   :  { %1995 = vmatprep.mubr.bf16.mxu1 %v1714_v3 }
 0x2be   :  { %1996 = vmatmul.mubr.bf16.gmra.mrb[140].mxu1 %v1713_v61 }
 0x319   :  { %v2712_v31 = vpop.f32.mrb[80].mxu1 }
 0x31a   :  { %v2713_v4 = vpop.f32.mrb[81].mxu1 }
 0x31b   :  { %v2714_v45 = vadd.f32 %v2713_v4, %v2712_v31  ;;  %v2715_v8 = vpop.f32.mrb[82].mxu1 }
 0x31c   :  { %v2716_v18 = vpop.f32.mrb[83].mxu1 }
 0x31d   :  { %v2717_v25 = vadd.f32 %v2716_v18, %v2715_v8 }
 0x31f   :  { %v2004_v51 = vpack.c.bf16 %v2717_v25, %v2714_v45 }
 0x321   :  { %v2028_v58 = vadd.bf16 %v4376_v6, %v2004_v51  ;;  %v2718_v40 = vpop.f32.mrb[84].mxu1 }
 0x322   :  { %v2719_v48 = vpop.f32.mrb[85].mxu1 }
 0x323   :  { %v2720_v26 = vadd.f32 %v2719_v48, %v2718_v40  ;;  %v2721_v16 = vpop.f32.mrb[86].mxu1  ;;  %v2044_v33 = vmax.bf16 %v3237_v2, %v2028_v58 }
 0x324   :  { %v2722_v12 = vpop.f32.mrb[87].mxu1 }
 0x325   :  { %v2723_v29 = vadd.f32 %v2722_v12, %v2721_v16  ;;  %2848 = vmatprep.mubr.bf16.mxu1 %v2044_v33 }
 0x327   :  { %v2005_v20 = vpack.c.bf16 %v2723_v29, %v2720_v26 }
 0x329   :  { %v2029_v43 = vadd.bf16 %v4376_v6, %v2005_v20  ;;  %v2724_v17 = vpop.f32.mrb[88].mxu1 }
 0x32a   :  { %v2725_v23 = vpop.f32.mrb[89].mxu1 }
 0x32b   :  { %v2045_v38 = vmax.bf16 %v3237_v2, %v2029_v43  ;;  %v2726_v37 = vadd.f32 %v2725_v23, %v2724_v17  ;;  %v2727_v53 = vpop.f32.mrb[90].mxu1 }
 0x32c   :  { %v2728_v13 = vpop.f32.mrb[91].mxu1 }
 0x32d   :  { %v2729_v39 = vadd.f32 %v2728_v13, %v2727_v53  ;;  %2849 = vmatmul.mubr.bf16.vlgmr.msra.gmra.mrb[144].mxu1 %v2045_v38 }
 0x32f   :  { %v2006_v7 = vpack.c.bf16 %v2729_v39, %v2726_v37 }
 0x331   :  { %v2030_v41 = vadd.bf16 %v4376_v6, %v2006_v7  ;;  %v2730_v11 = vpop.f32.mrb[92].mxu1 }
 0x332   :  { %v2731_v59 = vpop.f32.mrb[93].mxu1 }
 0x333   :  { %v2732_v10 = vadd.f32 %v2731_v59, %v2730_v11  ;;  %v2733_v54 = vpop.f32.mrb[94].mxu1  ;;  %v2046_v56 = vmax.bf16 %v3237_v2, %v2030_v41 }
 0x334   :  { %v2734_v5 = vpop.f32.mrb[95].mxu1 }
 0x335   :  { %v2735_v34 = vadd.f32 %v2734_v5, %v2733_v54  ;;  %2852 = vmatprep.mubr.bf16.mxu1 %v2046_v56 }
 0x337   :  { %v2007_v0 = vpack.c.bf16 %v2735_v34, %v2732_v10 }
 0x339   :  { %v2031_v49 = vadd.bf16 %v4376_v6, %v2007_v0  ;;  %v2736_v52 = vpop.f32.mrb[96].mxu1 }
 0x33a   :  { %v2737_v60 = vpop.f32.mrb[97].mxu1 }
 0x33b   :  { %v2738_v62 = vadd.f32 %v2737_v60, %v2736_v52  ;;  %v2739_v57 = vpop.f32.mrb[98].mxu1  ;;  %v2047_v9 = vmax.bf16 %v3237_v2, %v2031_v49 }
 0x33c   :  { %v2740_v47 = vpop.f32.mrb[99].mxu1 }
 0x33d   :  { %v2741_v50 = vadd.f32 %v2740_v47, %v2739_v57  ;;  %2853 = vmatmul.mubr.bf16.gmra.mrb[148].mxu1 %v2047_v9 }
 0x33f   :  { %v2008_v32 = vpack.c.bf16 %v2741_v50, %v2738_v62 }
 0x341   :  { %v2032_v24 = vadd.bf16 %v4376_v6, %v2008_v32  ;;  %v2742_v1 = vpop.f32.mrb[100].mxu1 }
 0x342   :  { %v2743_v55 = vpop.f32.mrb[101].mxu1 }
 0x343   :  { %v2744_v44 = vadd.f32 %v2743_v55, %v2742_v1  ;;  %v2745_v35 = vpop.f32.mrb[102].mxu1  ;;  %v2048_v28 = vmax.bf16 %v3237_v2, %v2032_v24 }
 0x344   :  { %v2746_v15 = vpop.f32.mrb[103].mxu1 }
 0x345   :  { %v2747_v63 = vadd.f32 %v2746_v15, %v2745_v35  ;;  %2856 = vmatprep.mubr.bf16.mxu1 %v2048_v28 }
 0x347   :  { %v2009_v22 = vpack.c.bf16 %v2747_v63, %v2744_v44 }
 0x349   :  { %v2033_v14 = vadd.bf16 %v4376_v6, %v2009_v22  ;;  %v2748_v21 = vpop.f32.mrb[104].mxu1 }
 0x34a   :  { %v2749_v27 = vpop.f32.mrb[105].mxu1 }
 0x34b   :  { %v2750_v36 = vadd.f32 %v2749_v27, %v2748_v21  ;;  %v2751_v42 = vpop.f32.mrb[106].mxu1  ;;  %v2049_v46 = vmax.bf16 %v3237_v2, %v2033_v14 }
 0x34c   :  { %v2752_v3 = vpop.f32.mrb[107].mxu1 }
 0x34d   :  { %v2753_v61 = vadd.f32 %v2752_v3, %v2751_v42  ;;  %2857 = vmatmul.mubr.bf16.gmra.mrb[152].mxu1 %v2049_v46 }
 0x34f   :  { %v2010_v30 = vpack.c.bf16 %v2753_v61, %v2750_v36 }
 0x351   :  { %v2034_v31 = vadd.bf16 %v4376_v6, %v2010_v30  ;;  %v2754_v19 = vpop.f32.mrb[108].mxu1 }
 0x352   :  { %v2755_v4 = vpop.f32.mrb[109].mxu1 }
 0x353   :  { %v2756_v45 = vadd.f32 %v2755_v4, %v2754_v19  ;;  %v2757_v8 = vpop.f32.mrb[110].mxu1  ;;  %v2050_v18 = vmax.bf16 %v3237_v2, %v2034_v31 }
 0x354   :  { %v2758_v25 = vpop.f32.mrb[111].mxu1 }
 0x355   :  { %v2759_v51 = vadd.f32 %v2758_v25, %v2757_v8  ;;  %2860 = vmatprep.mubr.bf16.mxu1 %v2050_v18 }
 0x357   :  { %v2011_v58 = vpack.c.bf16 %v2759_v51, %v2756_v45 }
 0x359   :  { %v2035_v40 = vadd.bf16 %v4376_v6, %v2011_v58  ;;  %v2760_v48 = vpop.f32.mrb[112].mxu1 }
 0x35a   :  { %v2761_v26 = vpop.f32.mrb[113].mxu1 }
 0x35b   :  { %v2762_v16 = vadd.f32 %v2761_v26, %v2760_v48  ;;  %v2763_v33 = vpop.f32.mrb[114].mxu1  ;;  %v2051_v12 = vmax.bf16 %v3237_v2, %v2035_v40 }
 0x35c   :  { %v2764_v29 = vpop.f32.mrb[115].mxu1 }
 0x35d   :  { %v2765_v20 = vadd.f32 %v2764_v29, %v2763_v33  ;;  %2861 = vmatmul.mubr.bf16.gmra.mrb[156].mxu1 %v2051_v12 }
 0x35f   :  { %v2012_v43 = vpack.c.bf16 %v2765_v20, %v2762_v16 }
 0x361   :  { %v2036_v17 = vadd.bf16 %v4376_v6, %v2012_v43  ;;  %v2766_v23 = vpop.f32.mrb[116].mxu1 }
 0x362   :  { %v2767_v38 = vpop.f32.mrb[117].mxu1 }
 0x363   :  { %v2768_v37 = vadd.f32 %v2767_v38, %v2766_v23  ;;  %v2769_v53 = vpop.f32.mrb[118].mxu1  ;;  %v2052_v13 = vmax.bf16 %v3237_v2, %v2036_v17 }
 0x364   :  { %v2770_v39 = vpop.f32.mrb[119].mxu1 }
 0x365   :  { %v2771_v7 = vadd.f32 %v2770_v39, %v2769_v53  ;;  %2864 = vmatprep.mubr.bf16.mxu1 %v2052_v13 }
 0x367   :  { %v2013_v41 = vpack.c.bf16 %v2771_v7, %v2768_v37  ;;  %v4413_v37 = vld [vmem:[%s4499_s8] ss:$0 sm:$0xff] }
 0x369   :  { %v2037_v11 = vadd.bf16 %v4376_v6, %v2013_v41  ;;  %v2772_v59 = vpop.f32.mrb[120].mxu1 }
 0x36a   :  { %v2773_v10 = vpop.f32.mrb[121].mxu1 }
 0x36b   :  { %v2774_v54 = vadd.f32 %v2773_v10, %v2772_v59  ;;  %v2775_v56 = vpop.f32.mrb[122].mxu1  ;;  %v2053_v5 = vmax.bf16 %v3237_v2, %v2037_v11 }
 0x36c   :  { %v2776_v34 = vpop.f32.mrb[123].mxu1 }
 0x36d   :  { %v2777_v0 = vadd.f32 %v2776_v34, %v2775_v56  ;;  %2865 = vmatmul.mubr.bf16.gmra.mrb[160].mxu1 %v2053_v5 }
 0x36f   :  { %v2014_v49 = vpack.c.bf16 %v2777_v0, %v2774_v54 }
 0x371   :  { %v2038_v52 = vadd.bf16 %v4376_v6, %v2014_v49  ;;  %v2778_v60 = vpop.f32.mrb[124].mxu1 }
 0x372   :  { %v2779_v62 = vpop.f32.mrb[125].mxu1 }
 0x373   :  { %v2780_v57 = vadd.f32 %v2779_v62, %v2778_v60  ;;  %v2781_v9 = vpop.f32.mrb[126].mxu1  ;;  %v2054_v47 = vmax.bf16 %v3237_v2, %v2038_v52 }
 0x374   :  { %v2782_v50 = vpop.f32.mrb[127].mxu1 }
 0x375   :  { %v2783_v32 = vadd.f32 %v2782_v50, %v2781_v9  ;;  %2868 = vmatprep.mubr.bf16.mxu1 %v2054_v47 }
 0x377   :  { %v2015_v24 = vpack.c.bf16 %v2783_v32, %v2780_v57 }
 0x379   :  { %v2039_v1 = vadd.bf16 %v4376_v6, %v2015_v24  ;;  %v2784_v55 = vpop.f32.mrb[128].mxu1 }
 0x37a   :  { %v2785_v44 = vpop.f32.mrb[129].mxu1 }
 0x37b   :  { %v2786_v35 = vadd.f32 %v2785_v44, %v2784_v55  ;;  %v2787_v28 = vpop.f32.mrb[130].mxu1  ;;  %v2055_v15 = vmax.bf16 %v3237_v2, %v2039_v1 }
 0x37c   :  { %v2788_v63 = vpop.f32.mrb[131].mxu1 }
 0x37d   :  { %v2789_v22 = vadd.f32 %v2788_v63, %v2787_v28  ;;  %2869 = vmatmul.mubr.bf16.gmra.mrb[164].mxu1 %v2055_v15 }
 0x37f   :  { %v2016_v14 = vpack.c.bf16 %v2789_v22, %v2786_v35 }
 0x381   :  { %v2040_v21 = vadd.bf16 %v4376_v6, %v2016_v14  ;;  %v2790_v27 = vpop.f32.mrb[132].mxu1 }
 0x382   :  { %v2791_v36 = vpop.f32.mrb[133].mxu1 }
 0x383   :  { %v2792_v42 = vadd.f32 %v2791_v36, %v2790_v27  ;;  %v2793_v46 = vpop.f32.mrb[134].mxu1  ;;  %v2056_v3 = vmax.bf16 %v3237_v2, %v2040_v21 }
 0x384   :  { %v2794_v61 = vpop.f32.mrb[135].mxu1 }
 0x385   :  { %v2795_v30 = vadd.f32 %v2794_v61, %v2793_v46  ;;  %2872 = vmatprep.mubr.bf16.mxu1 %v2056_v3 }
 0x387   :  { %v2017_v31 = vpack.c.bf16 %v2795_v30, %v2792_v42 }
 0x389   :  { %v2041_v19 = vadd.bf16 %v4376_v6, %v2017_v31  ;;  %v2796_v4 = vpop.f32.mrb[136].mxu1 }
 0x38a   :  { %v2797_v45 = vpop.f32.mrb[137].mxu1 }
 0x38b   :  { %v2798_v8 = vadd.f32 %v2797_v45, %v2796_v4  ;;  %v2799_v18 = vpop.f32.mrb[138].mxu1  ;;  %v2057_v25 = vmax.bf16 %v3237_v2, %v2041_v19 }
 0x38c   :  { %v2800_v51 = vpop.f32.mrb[139].mxu1 }
 0x38d   :  { %v2801_v58 = vadd.f32 %v2800_v51, %v2799_v18  ;;  %2873 = vmatmul.mubr.bf16.gmra.mrb[168].mxu1 %v2057_v25 }
 0x38f   :  { %v2018_v40 = vpack.c.bf16 %v2801_v58, %v2798_v8 }
 0x391   :  { %v2042_v48 = vadd.bf16 %v4376_v6, %v2018_v40  ;;  %v2802_v26 = vpop.f32.mrb[140].mxu1 }
 0x392   :  { %v2803_v16 = vpop.f32.mrb[141].mxu1 }
 0x393   :  { %v2804_v33 = vadd.f32 %v2803_v16, %v2802_v26  ;;  %v2805_v12 = vpop.f32.mrb[142].mxu1  ;;  %v2058_v29 = vmax.bf16 %v3237_v2, %v2042_v48 }
 0x394   :  { %v2806_v20 = vpop.f32.mrb[143].mxu1 }
 0x395   :  { %v2807_v43 = vadd.f32 %v2806_v20, %v2805_v12  ;;  %2876 = vmatprep.mubr.bf16.mxu1 %v2058_v29 }
 0x397   :  { %v2019_v17 = vpack.c.bf16 %v2807_v43, %v2804_v33 }
 0x399   :  { %v2043_v23 = vadd.bf16 %v4376_v6, %v2019_v17 }
 0x39b   :  { %v2059_v38 = vmax.bf16 %v3237_v2, %v2043_v23 }
 0x39d   :  { %2877 = vmatmul.mubr.bf16.gmra.mrb[172].mxu1 %v2059_v38 }
 0x400   :  { %v2850_v53 = vpop.f32.mrb[144].mxu1 }
 0x401   :  { %v2174_v13 = vadd.f32 %v2850_v53, %v4413_v37  ;;  %v2165_v39 = vpop.f32.mrb[145].mxu1 }
 0x402   :  { %v2166_v7 = vadd.f32 %v4413_v37, %v2165_v39  ;;  %v2851_v41 = vpop.f32.mrb[146].mxu1 }
 0x403   :  { %v2666_v11 = vmul.f32 -1.442695, %v2174_v13  ;;  %v2177_v59 = vadd.f32 %v2851_v41, %v4413_v37  ;;  %v2168_v10 = vpop.f32.mrb[147].mxu1 }
 0x404   :  { %v2664_v6 = vmul.f32 -1.442695, %v2166_v7  ;;  %v2169_v2 = vadd.f32 %v4413_v37, %v2168_v10 }
 0x405   :  { %3085 = vpow2.f32 %v2666_v11  ;;  %v2667_v54 = vmul.f32 -1.442695, %v2177_v59 }
 0x406   :  { %3087 = vpow2.f32 %v2664_v6  ;;  %v2665_v56 = vmul.f32 -1.442695, %v2169_v2 }
 0x407   :  { %3089 = vpow2.f32 %v2667_v54 }
 0x408   :  { %3091 = vpow2.f32 %v2665_v56 }
 0x40f   :  { %v3086_v5 = vpop.eup %3085 }
 0x410   :  { %v3088_v34 = vpop.eup %3087  ;;  %v2390_v0 = vadd.f32 1.0, %v3086_v5  ;;  %v2854_v49 = vpop.f32.mrb[148].mxu1 }
 0x411   :  { %v3090_v52 = vpop.eup %3089  ;;  %v2388_v60 = vadd.f32 1.0, %v3088_v34  ;;  %v2190_v62 = vadd.f32 %v2854_v49, %v4413_v37  ;;  %v2181_v57 = vpop.f32.mrb[149].mxu1 }
 0x412   :  { %v3092_v9 = vpop.eup %3091  ;;  %3093 = vrcp.f32 %v2390_v0  ;;  %v2391_v47 = vadd.f32 1.0, %v3090_v52  ;;  %v2182_v50 = vadd.f32 %v4413_v37, %v2181_v57  ;;  %v2855_v32 = vpop.f32.mrb[150].mxu1 }
 0x413   :  { %3095 = vrcp.f32 %v2388_v60  ;;  %v2389_v24 = vadd.f32 1.0, %v3092_v9  ;;  %v2670_v1 = vmul.f32 -1.442695, %v2190_v62  ;;  %v2193_v55 = vadd.f32 %v2855_v32, %v4413_v37  ;;  %v2184_v44 = vpop.f32.mrb[151].mxu1 }
 0x414   :  { %3097 = vrcp.f32 %v2391_v47  ;;  %v2668_v35 = vmul.f32 -1.442695, %v2182_v50  ;;  %v2185_v28 = vadd.f32 %v4413_v37, %v2184_v44 }
 0x415   :  { %3099 = vrcp.f32 %v2389_v24  ;;  %v2671_v15 = vmul.f32 -1.442695, %v2193_v55 }
 0x416   :  { %3101 = vpow2.f32 %v2670_v1  ;;  %v2669_v63 = vmul.f32 -1.442695, %v2185_v28 }
 0x417   :  { %3103 = vpow2.f32 %v2668_v35 }
 0x418   :  { %3105 = vpow2.f32 %v2671_v15 }
 0x419   :  { %3107 = vpow2.f32 %v2669_v63 }
 0x41c   :  { %v3094_v22 = vpop.eup %3093 }
 0x41d   :  { %v3096_v14 = vpop.eup %3095  ;;  %2487 = vst.msk [vmem:[#allocation2 + $0x10] sm:$0xff] %vm2484_vm1, %v3094_v22 }
 0x41e   :  { %v3098_v21 = vpop.eup %3097  ;;  %2485 = vst.msk [vmem:[#allocation2] sm:$0xff] %vm2484_vm1, %v3096_v14 }
 0x41f   :  { %v3100_v27 = vpop.eup %3099  ;;  %2488 = vst.msk [vmem:[#allocation2 + $0x18] sm:$0xff] %vm2484_vm1, %v3098_v21 }
 0x420   :  { %v3102_v36 = vpop.eup %3101  ;;  %2486 = vst.msk [vmem:[#allocation2 + $0x8] sm:$0xff] %vm2484_vm1, %v3100_v27  ;;  %v2858_v42 = vpop.f32.mrb[152].mxu1 }
 0x421   :  { %v3104_v46 = vpop.eup %3103  ;;  %v2394_v3 = vadd.f32 1.0, %v3102_v36  ;;  %v2206_v61 = vadd.f32 %v2858_v42, %v4413_v37  ;;  %v2197_v30 = vpop.f32.mrb[153].mxu1 }
 0x422   :  { %v3106_v31 = vpop.eup %3105  ;;  %v2392_v19 = vadd.f32 1.0, %v3104_v46  ;;  %v2198_v4 = vadd.f32 %v4413_v37, %v2197_v30  ;;  %v2859_v45 = vpop.f32.mrb[154].mxu1 }
 0x423   :  { %v3108_v8 = vpop.eup %3107  ;;  %3109 = vrcp.f32 %v2394_v3  ;;  %v2395_v18 = vadd.f32 1.0, %v3106_v31  ;;  %v2674_v25 = vmul.f32 -1.442695, %v2206_v61  ;;  %v2209_v51 = vadd.f32 %v2859_v45, %v4413_v37  ;;  %v2200_v58 = vpop.f32.mrb[155].mxu1 }
 0x424   :  { %3111 = vrcp.f32 %v2392_v19  ;;  %v2393_v40 = vadd.f32 1.0, %v3108_v8  ;;  %v2672_v48 = vmul.f32 -1.442695, %v2198_v4  ;;  %v2201_v26 = vadd.f32 %v4413_v37, %v2200_v58 }
 0x425   :  { %3113 = vrcp.f32 %v2395_v18  ;;  %v2675_v16 = vmul.f32 -1.442695, %v2209_v51 }
 0x426   :  { %3115 = vrcp.f32 %v2393_v40  ;;  %v2673_v33 = vmul.f32 -1.442695, %v2201_v26 }
 0x427   :  { %3117 = vpow2.f32 %v2674_v25 }
 0x428   :  { %3119 = vpow2.f32 %v2672_v48 }
 0x429   :  { %3121 = vpow2.f32 %v2675_v16 }
 0x42a   :  { %3123 = vpow2.f32 %v2673_v33 }
 0x42d   :  { %v3110_v12 = vpop.eup %3109 }
 0x42e   :  { %v3112_v29 = vpop.eup %3111  ;;  %2491 = vst.msk [vmem:[#allocation2 + $0x30] sm:$0xff] %vm2484_vm1, %v3110_v12 }
 0x42f   :  { %v3114_v20 = vpop.eup %3113  ;;  %2489 = vst.msk [vmem:[#allocation2 + $0x20] sm:$0xff] %vm2484_vm1, %v3112_v29 }
 0x430   :  { %v3116_v43 = vpop.eup %3115  ;;  %2492 = vst.msk [vmem:[#allocation2 + $0x38] sm:$0xff] %vm2484_vm1, %v3114_v20  ;;  %v2862_v17 = vpop.f32.mrb[156].mxu1 }
 0x431   :  { %v3118_v23 = vpop.eup %3117  ;;  %2490 = vst.msk [vmem:[#allocation2 + $0x28] sm:$0xff] %vm2484_vm1, %v3116_v43  ;;  %v2222_v38 = vadd.f32 %v2862_v17, %v4413_v37  ;;  %v2213_v53 = vpop.f32.mrb[157].mxu1 }
 0x432   :  { %v3120_v13 = vpop.eup %3119  ;;  %v2398_v39 = vadd.f32 1.0, %v3118_v23  ;;  %v2214_v7 = vadd.f32 %v4413_v37, %v2213_v53  ;;  %v2863_v41 = vpop.f32.mrb[158].mxu1 }
 0x433   :  { %v3122_v11 = vpop.eup %3121  ;;  %v2396_v59 = vadd.f32 1.0, %v3120_v13  ;;  %v2225_v10 = vadd.f32 %v2863_v41, %v4413_v37  ;;  %v2216_v6 = vpop.f32.mrb[159].mxu1  ;;  %v2678_v56 = vmul.f32 -1.442695, %v2222_v38 }
 0x434   :  { %v3124_v2 = vpop.eup %3123  ;;  %3125 = vrcp.f32 %v2398_v39  ;;  %v2399_v54 = vadd.f32 1.0, %v3122_v11  ;;  %v2217_v5 = vadd.f32 %v4413_v37, %v2216_v6  ;;  %v2676_v0 = vmul.f32 -1.442695, %v2214_v7 }
 0x435   :  { %3127 = vrcp.f32 %v2396_v59  ;;  %v2397_v34 = vadd.f32 1.0, %v3124_v2  ;;  %v2679_v49 = vmul.f32 -1.442695, %v2225_v10 }
 0x436   :  { %3129 = vrcp.f32 %v2399_v54  ;;  %v2677_v52 = vmul.f32 -1.442695, %v2217_v5 }
 0x437   :  { %3131 = vrcp.f32 %v2397_v34 }
 0x438   :  { %3133 = vpow2.f32 %v2678_v56 }
 0x439   :  { %3135 = vpow2.f32 %v2676_v0 }
 0x43a   :  { %3137 = vpow2.f32 %v2679_v49 }
 0x43b   :  { %3139 = vpow2.f32 %v2677_v52 }
 0x43e   :  { %v3126_v60 = vpop.eup %3125 }
 0x43f   :  { %v3128_v62 = vpop.eup %3127  ;;  %2495 = vst.msk [vmem:[#allocation2 + $0x50] sm:$0xff] %vm2484_vm1, %v3126_v60 }
 0x440   :  { %v3130_v57 = vpop.eup %3129  ;;  %2493 = vst.msk [vmem:[#allocation2 + $0x40] sm:$0xff] %vm2484_vm1, %v3128_v62  ;;  %v2866_v9 = vpop.f32.mrb[160].mxu1 }
 0x441   :  { %v3132_v47 = vpop.eup %3131  ;;  %2496 = vst.msk [vmem:[#allocation2 + $0x58] sm:$0xff] %vm2484_vm1, %v3130_v57  ;;  %v2238_v50 = vadd.f32 %v2866_v9, %v4413_v37  ;;  %v2229_v32 = vpop.f32.mrb[161].mxu1 }
 0x442   :  { %v3134_v24 = vpop.eup %3133  ;;  %2494 = vst.msk [vmem:[#allocation2 + $0x48] sm:$0xff] %vm2484_vm1, %v3132_v47  ;;  %v2230_v1 = vadd.f32 %v4413_v37, %v2229_v32  ;;  %v2867_v55 = vpop.f32.mrb[162].mxu1 }
 0x443   :  { %v3136_v44 = vpop.eup %3135  ;;  %v2402_v35 = vadd.f32 1.0, %v3134_v24  ;;  %v2241_v28 = vadd.f32 %v2867_v55, %v4413_v37  ;;  %v2232_v15 = vpop.f32.mrb[163].mxu1  ;;  %v2682_v36 = vmul.f32 -1.442695, %v2238_v50 }
 0x444   :  { %v3138_v63 = vpop.eup %3137  ;;  %v2400_v22 = vadd.f32 1.0, %v3136_v44  ;;  %v2233_v14 = vadd.f32 %v4413_v37, %v2232_v15  ;;  %v2680_v46 = vmul.f32 -1.442695, %v2230_v1 }
 0x445   :  { %v3140_v21 = vpop.eup %3139  ;;  %3141 = vrcp.f32 %v2402_v35  ;;  %v2403_v27 = vadd.f32 1.0, %v3138_v63  ;;  %v2683_v3 = vmul.f32 -1.442695, %v2241_v28 }
 0x446   :  { %3143 = vrcp.f32 %v2400_v22  ;;  %v2401_v42 = vadd.f32 1.0, %v3140_v21  ;;  %v2681_v61 = vmul.f32 -1.442695, %v2233_v14 }
 0x447   :  { %3145 = vrcp.f32 %v2403_v27 }
 0x448   :  { %3147 = vrcp.f32 %v2401_v42 }
 0x449   :  { %3149 = vpow2.f32 %v2682_v36 }
 0x44a   :  { %3151 = vpow2.f32 %v2680_v46 }
 0x44b   :  { %3153 = vpow2.f32 %v2683_v3 }
 0x44c   :  { %3155 = vpow2.f32 %v2681_v61 }
 0x44f   :  { %v3142_v30 = vpop.eup %3141 }
 0x450   :  { %v3144_v31 = vpop.eup %3143  ;;  %2499 = vst.msk [vmem:[#allocation2 + $0x70] sm:$0xff] %vm2484_vm1, %v3142_v30  ;;  %v2870_v19 = vpop.f32.mrb[164].mxu1 }
 0x451   :  { %v3146_v4 = vpop.eup %3145  ;;  %2497 = vst.msk [vmem:[#allocation2 + $0x60] sm:$0xff] %vm2484_vm1, %v3144_v31  ;;  %v2254_v45 = vadd.f32 %v2870_v19, %v4413_v37  ;;  %v2245_v8 = vpop.f32.mrb[165].mxu1 }
 0x452   :  { %v3148_v18 = vpop.eup %3147  ;;  %2500 = vst.msk [vmem:[#allocation2 + $0x78] sm:$0xff] %vm2484_vm1, %v3146_v4  ;;  %v2246_v25 = vadd.f32 %v4413_v37, %v2245_v8  ;;  %v2871_v51 = vpop.f32.mrb[166].mxu1 }
 0x453   :  { %v3150_v58 = vpop.eup %3149  ;;  %2498 = vst.msk [vmem:[#allocation2 + $0x68] sm:$0xff] %vm2484_vm1, %v3148_v18  ;;  %v2686_v40 = vmul.f32 -1.442695, %v2254_v45  ;;  %v2257_v48 = vadd.f32 %v2871_v51, %v4413_v37  ;;  %v2248_v26 = vpop.f32.mrb[167].mxu1 }
 0x454   :  { %v3152_v16 = vpop.eup %3151  ;;  %v2406_v33 = vadd.f32 1.0, %v3150_v58  ;;  %v2249_v12 = vadd.f32 %v4413_v37, %v2248_v26  ;;  %v2684_v23 = vmul.f32 -1.442695, %v2246_v25 }
 0x455   :  { %v3154_v29 = vpop.eup %3153  ;;  %v2404_v20 = vadd.f32 1.0, %v3152_v16  ;;  %3157 = vpow2.f32 %v2686_v40  ;;  %v2687_v53 = vmul.f32 -1.442695, %v2257_v48 }
 0x456   :  { %v3156_v43 = vpop.eup %3155  ;;  %3159 = vrcp.f32 %v2406_v33  ;;  %v2407_v17 = vadd.f32 1.0, %v3154_v29  ;;  %v2685_v13 = vmul.f32 -1.442695, %v2249_v12 }
 0x457   :  { %3161 = vrcp.f32 %v2404_v20  ;;  %v2405_v38 = vadd.f32 1.0, %v3156_v43 }
 0x458   :  { %3163 = vrcp.f32 %v2407_v17 }
 0x459   :  { %3165 = vrcp.f32 %v2405_v38 }
 0x45a   :  { %3167 = vpow2.f32 %v2684_v23 }
 0x45b   :  { %3169 = vpow2.f32 %v2687_v53 }
 0x45c   :  { %3171 = vpow2.f32 %v2685_v13 }
 0x45f   :  { %v3158_v39 = vpop.eup %3157 }
 0x460   :  { %v3160_v7 = vpop.eup %3159  ;;  %v2410_v41 = vadd.f32 1.0, %v3158_v39  ;;  %v2874_v11 = vpop.f32.mrb[168].mxu1 }
 0x461   :  { %v3162_v59 = vpop.eup %3161  ;;  %2503 = vst.msk [vmem:[#allocation2 + $0x90] sm:$0xff] %vm2484_vm1, %v3160_v7  ;;  %v2270_v10 = vadd.f32 %v2874_v11, %v4413_v37  ;;  %v2261_v6 = vpop.f32.mrb[169].mxu1 }
 0x462   :  { %v3164_v2 = vpop.eup %3163  ;;  %2501 = vst.msk [vmem:[#allocation2 + $0x80] sm:$0xff] %vm2484_vm1, %v3162_v59  ;;  %3173 = vrcp.f32 %v2410_v41  ;;  %v2262_v54 = vadd.f32 %v4413_v37, %v2261_v6  ;;  %v2875_v56 = vpop.f32.mrb[170].mxu1 }
 0x463   :  { %v3166_v5 = vpop.eup %3165  ;;  %2504 = vst.msk [vmem:[#allocation2 + $0x98] sm:$0xff] %vm2484_vm1, %v3164_v2  ;;  %v2690_v34 = vmul.f32 -1.442695, %v2270_v10  ;;  %v2273_v0 = vadd.f32 %v2875_v56, %v4413_v37  ;;  %v2264_v49 = vpop.f32.mrb[171].mxu1 }
 0x464   :  { %v3168_v52 = vpop.eup %3167  ;;  %2502 = vst.msk [vmem:[#allocation2 + $0x88] sm:$0xff] %vm2484_vm1, %v3166_v5  ;;  %v2688_v60 = vmul.f32 -1.442695, %v2262_v54  ;;  %v2265_v62 = vadd.f32 %v4413_v37, %v2264_v49 }
 0x465   :  { %v3170_v57 = vpop.eup %3169  ;;  %v2408_v9 = vadd.f32 1.0, %v3168_v52  ;;  %3175 = vpow2.f32 %v2690_v34  ;;  %v2691_v32 = vmul.f32 -1.442695, %v2273_v0 }
 0x466   :  { %v3172_v47 = vpop.eup %3171  ;;  %v2411_v50 = vadd.f32 1.0, %v3170_v57  ;;  %3177 = vpow2.f32 %v2688_v60  ;;  %v2689_v1 = vmul.f32 -1.442695, %v2265_v62 }
 0x467   :  { %3179 = vrcp.f32 %v2408_v9  ;;  %v2409_v24 = vadd.f32 1.0, %v3172_v47 }
 0x468   :  { %3181 = vrcp.f32 %v2411_v50 }
 0x469   :  { %3183 = vrcp.f32 %v2409_v24 }
 0x46a   :  { %3185 = vpow2.f32 %v2691_v32 }
 0x46b   :  { %3187 = vpow2.f32 %v2689_v1 }
 0x46c   :  { %v3174_v55 = vpop.eup %3173 }
 0x46d   :  { %2507 = vst.msk [vmem:[#allocation2 + $0xb0] sm:$0xff] %vm2484_vm1, %v3174_v55 }
 0x46f   :  { %v3176_v44 = vpop.eup %3175 }
 0x470   :  { %v3178_v35 = vpop.eup %3177  ;;  %v2414_v28 = vadd.f32 1.0, %v3176_v44  ;;  %v2878_v15 = vpop.f32.mrb[172].mxu1 }
 0x471   :  { %v3180_v63 = vpop.eup %3179  ;;  %v2412_v22 = vadd.f32 1.0, %v3178_v35  ;;  %v2286_v14 = vadd.f32 %v2878_v15, %v4413_v37  ;;  %v2277_v21 = vpop.f32.mrb[173].mxu1 }
 0x472   :  { %v3182_v27 = vpop.eup %3181  ;;  %2505 = vst.msk [vmem:[#allocation2 + $0xa0] sm:$0xff] %vm2484_vm1, %v3180_v63  ;;  %3189 = vrcp.f32 %v2414_v28  ;;  %v2278_v36 = vadd.f32 %v4413_v37, %v2277_v21  ;;  %v2879_v42 = vpop.f32.mrb[174].mxu1 }
 0x473   :  { %v3184_v46 = vpop.eup %3183  ;;  %2508 = vst.msk [vmem:[#allocation2 + $0xb8] sm:$0xff] %vm2484_vm1, %v3182_v27  ;;  %3191 = vrcp.f32 %v2412_v22  ;;  %v2694_v3 = vmul.f32 -1.442695, %v2286_v14  ;;  %v2289_v61 = vadd.f32 %v2879_v42, %v4413_v37  ;;  %v2280_v30 = vpop.f32.mrb[175].mxu1 }
 0x474   :  { %v3186_v31 = vpop.eup %3185  ;;  %2506 = vst.msk [vmem:[#allocation2 + $0xa8] sm:$0xff] %vm2484_vm1, %v3184_v46  ;;  %v2692_v19 = vmul.f32 -1.442695, %v2278_v36  ;;  %v2281_v4 = vadd.f32 %v4413_v37, %v2280_v30 }
 0x475   :  { %v3188_v45 = vpop.eup %3187  ;;  %v2415_v8 = vadd.f32 1.0, %v3186_v31  ;;  %3193 = vpow2.f32 %v2694_v3  ;;  %v2695_v18 = vmul.f32 -1.442695, %v2289_v61 }
 0x476   :  { %v2413_v25 = vadd.f32 1.0, %v3188_v45  ;;  %3195 = vpow2.f32 %v2692_v19  ;;  %v2693_v51 = vmul.f32 -1.442695, %v2281_v4 }
 0x477   :  { %3197 = vrcp.f32 %v2415_v8 }
 0x478   :  { %3199 = vrcp.f32 %v2413_v25 }
 0x479   :  { %3201 = vpow2.f32 %v2695_v18 }
 0x47a   :  { %3203 = vpow2.f32 %v2693_v51 }
 0x47c   :  { %v3190_v58 = vpop.eup %3189 }
 0x47d   :  { %v3192_v40 = vpop.eup %3191  ;;  %2511 = vst.msk [vmem:[#allocation2 + $0xd0] sm:$0xff] %vm2484_vm1, %v3190_v58 }
 0x47e   :  { %2509 = vst.msk [vmem:[#allocation2 + $0xc0] sm:$0xff] %vm2484_vm1, %v3192_v40 }
 0x47f   :  { %v3194_v48 = vpop.eup %3193 }
 0x480   :  { %v3196_v26 = vpop.eup %3195  ;;  %v2418_v37 = vadd.f32 1.0, %v3194_v48 }
 0x481   :  { %v3198_v16 = vpop.eup %3197  ;;  %v2416_v33 = vadd.f32 1.0, %v3196_v26 }
 0x482   :  { %v3200_v12 = vpop.eup %3199  ;;  %2512 = vst.msk [vmem:[#allocation2 + $0xd8] sm:$0xff] %vm2484_vm1, %v3198_v16  ;;  %3205 = vrcp.f32 %v2418_v37 }
 0x483   :  { %v3202_v29 = vpop.eup %3201  ;;  %2510 = vst.msk [vmem:[#allocation2 + $0xc8] sm:$0xff] %vm2484_vm1, %v3200_v12  ;;  %3207 = vrcp.f32 %v2416_v33 }
 0x484   :  { %v3204_v20 = vpop.eup %3203  ;;  %v2419_v43 = vadd.f32 1.0, %v3202_v29 }
 0x485   :  { %v2417_v17 = vadd.f32 1.0, %v3204_v20 }
 0x486   :  { %3209 = vrcp.f32 %v2419_v43 }
 0x487   :  { %3211 = vrcp.f32 %v2417_v17 }
 0x48c   :  { %v3206_v23 = vpop.eup %3205 }
 0x48d   :  { %v3208_v38 = vpop.eup %3207  ;;  %2515 = vst.msk [vmem:[#allocation2 + $0xf0] sm:$0xff] %vm2484_vm1, %v3206_v23 }
 0x48e   :  { %2513 = vst.msk [vmem:[#allocation2 + $0xe0] sm:$0xff] %vm2484_vm1, %v3208_v38 }
 0x490   :  { %v3210_v53 = vpop.eup %3209 }
 0x491   :  { %v3212_v13 = vpop.eup %3211  ;;  %2516 = vst.msk [vmem:[#allocation2 + $0xf8] sm:$0xff] %vm2484_vm1, %v3210_v53 }
 0x492   :  { %2514 = vst.msk [vmem:[#allocation2 + $0xe8] sm:$0xff] %vm2484_vm1, %v3212_v13 }
 0x493   :  { %2521 = vsyncadd [#allocation3], 3968  ;;  %s3239_s8 = smov [#allocation2]  }
 0x494   :  { %s2522_s3 = sshll.u32 %s3239_s8, 4  ;;  %s2523_s3 = int_to_ptr.vmem [resolvable:$true] %s2522_s3 }
 0x495   :  { %s3213_s16 = scalar_lea.vmem %s2523_s3, 128  ;;  %s3217_s17 = scalar_lea.vmem %s2523_s3, 4096 }
 0x496   :  { %p3214_p0 = scmp.ne.s32.totalorder %s2523_s3, %s3213_s16  ;;  %p3218_p1 = scmp.lt.s32.totalorder %s2523_s3, %s2523_s3 }
 0x497   :  { %p3219_p2 = scmp.lt.s32.totalorder %s3217_s17, %s3213_s16 }
 0x499   :  { %p3220_p3 = por %p3219_p2, %p3218_p1 }
 0x49b   :  { %p3221_p4 = pnand %p3220_p3, %p3214_p0 }
 0x49d   :  { %3224 = shalt.err (!%p3221_p4)
}
 0x49e   :  { %s3225_s20 = scalar_lea.hbm %s4500_s9, 128 }
 0x49f   :  { %p3226_p5 = scmp.ne.s32.totalorder %s4500_s9, %s3225_s20  ;;  %p3229_p6 = scmp.lt.u32.totalorder %s3225_s20, %s4500_s9 }
 0x4a1   :  { %p3231_p7 = pnand %p3229_p6, %p3226_p5 }
 0x4a3   :  { %3234 = shalt.err (!%p3231_p7)
}
 0x4a4   :  { %s3240_s4 = smov 128   ;;  %s3241_s23 = smov 8  }
 0x4a5   :  { %2528 = dma.vmem_to_hbm [thread:$0]  %s2523_s3, 128, %s4500_s9, [#allocation3], %s3240_s4, %s3240_s4, %s3241_s23  }
 0x4a6   :  { %3235 = dma.done.wait [#allocation3], 4096  }
 0x4a7   :  { %3236 = vsyncadd [#allocation3], 4294963200 }
 0x4a8   :  { %2532 = vsyncpa [#allocation3], 1 }

</bundles_post_ra>
